<compile_context>
chip_gen: v7x
topology: tpu7x:2x2x1
jax: 0.10.0
libtpu: 0.0.40
codegen_flags: <defaults>
</compile_context>

<pallas_src>
import functools

import jax
import jax.numpy as jnp
from jax import lax
from jax.experimental import pallas as pl
from jax.experimental.pallas import tpu as pltpu


_VMEM_LIMIT = 32 * 1024 * 1024   # explicit scoped-VMEM budget, safe on v5e/v6e/v7x


def _cparams(dims):
    return pltpu.CompilerParams(dimension_semantics=dims,
                                vmem_limit_bytes=_VMEM_LIMIT)


def _row_tile(m, target=256):
    """Largest row tile <= target that divides m (full m when small)."""
    if m <= target:
        return m
    for t in range(target, 0, -1):
        if m % t == 0:
            return t
    return m


# ----------------------------------------------------------------------------
# Kernel 1: fused projections of x  ->  q_self, kv_self, q_enc, q_dec
# ----------------------------------------------------------------------------
def _x_proj_kernel(x_ref, wqs_ref, bqs_ref, wkvs_ref, bkvs_ref,
                   wqe_ref, bqe_ref, wqd_ref, bqd_ref,
                   qs_ref, kvs_ref, qe_ref, qd_ref):
    xb = x_ref[...].astype(jnp.bfloat16)

    def proj(w_ref, b_ref):
        acc = jnp.dot(xb, w_ref[...], preferred_element_type=jnp.float32)
        return (acc + b_ref[...]).astype(jnp.bfloat16)

    qs_ref[...] = proj(wqs_ref, bqs_ref)     # (tm, E)   scaled q for self-attn
    kvs_ref[...] = proj(wkvs_ref, bkvs_ref)  # (tm, 2E)  k|v for self-attn
    qe_ref[...] = proj(wqe_ref, bqe_ref)     # (tm, E)   scaled q for enc-attn
    qd_ref[...] = proj(wqd_ref, bqd_ref)     # (tm, E)   scaled q for dec-attn


def x_projections(x_flat, p):
    M, E = x_flat.shape
    tm = _row_tile(M)
    row = lambda i: (i, 0)
    full = lambda i: (0, 0)
    return pl.pallas_call(
        _x_proj_kernel,
        out_shape=(
            jax.ShapeDtypeStruct((M, E), jnp.bfloat16),
            jax.ShapeDtypeStruct((M, 2 * E), jnp.bfloat16),
            jax.ShapeDtypeStruct((M, E), jnp.bfloat16),
            jax.ShapeDtypeStruct((M, E), jnp.bfloat16),
        ),
        grid=(M // tm,),
        in_specs=[
            pl.BlockSpec((tm, E), row),
            pl.BlockSpec((E, E), full), pl.BlockSpec((1, E), full),
            pl.BlockSpec((E, 2 * E), full), pl.BlockSpec((1, 2 * E), full),
            pl.BlockSpec((E, E), full), pl.BlockSpec((1, E), full),
            pl.BlockSpec((E, E), full), pl.BlockSpec((1, E), full),
        ],
        out_specs=(
            pl.BlockSpec((tm, E), row),
            pl.BlockSpec((tm, 2 * E), row),
            pl.BlockSpec((tm, E), row),
            pl.BlockSpec((tm, E), row),
        ),
        compiler_params=_cparams(("parallel",)),
    )(x_flat, p["wq_self"], p["bq_self"], p["w_kv_self"], p["b_kv_self"],
      p["wq_enc"], p["bq_enc"], p["wq_dec"], p["bq_dec"])


# ----------------------------------------------------------------------------
# Kernel 2: generic M-tiled linear (used for the fused K|V memory projections)
# ----------------------------------------------------------------------------
def _linear_kernel(x_ref, w_ref, b_ref, o_ref):
    acc = jnp.dot(x_ref[...].astype(jnp.bfloat16), w_ref[...],
                  preferred_element_type=jnp.float32)
    o_ref[...] = (acc + b_ref[...]).astype(o_ref.dtype)


def linear(x, w, b, out_dtype=jnp.bfloat16):
    M, K = x.shape
    N = w.shape[1]
    tm = _row_tile(M)
    return pl.pallas_call(
        _linear_kernel,
        out_shape=jax.ShapeDtypeStruct((M, N), out_dtype),
        grid=(M // tm,),
        in_specs=[
            pl.BlockSpec((tm, K), lambda i: (i, 0)),
            pl.BlockSpec((K, N), lambda i: (0, 0)),
            pl.BlockSpec((1, N), lambda i: (0, 0)),
        ],
        out_specs=pl.BlockSpec((tm, N), lambda i: (i, 0)),
        compiler_params=_cparams(("parallel",)),
    )(x, w, b)


# ----------------------------------------------------------------------------
# Kernel 3: fused multi-head attention branch
#   softmax(q k^T) v  (all heads)  + output projection + residual + LayerNorm
#   (scale already folded into q).  Optional head-mean attention weights.
# ----------------------------------------------------------------------------
def _mha_kernel(q_ref, kv_ref, res_ref, wo_ref, bo_ref, g_ref, be_ref,
                *out_refs, num_heads, need_weights):
    T, E = q_ref.shape[1], q_ref.shape[2]
    d = E // num_heads

    q = q_ref[0]                      # (T, E)  bf16, already scaled
    kv = kv_ref[0]                    # (S, 2E) bf16
    k = kv[:, :E]                     # (S, E)
    v = kv[:, E:]                     # (S, E)
    wo = wo_ref[...]                  # (E, E)  bf16

    o_acc = jnp.zeros((T, E), jnp.float32)
    w_acc = None
    for h in range(num_heads):
        lo, hi = h * d, (h + 1) * d
        qh, kh, vh = q[:, lo:hi], k[:, lo:hi], v[:, lo:hi]
        # scores: contract on head_dim without materializing a transpose
        s = lax.dot_general(qh, kh, (((1,), (1,)), ((), ())),
                            preferred_element_type=jnp.float32)        # (T, S)
        s = s - jnp.max(s, axis=-1, keepdims=True)
        p = jnp.exp(s)
        p = p * pl.reciprocal(jnp.sum(p, axis=-1, keepdims=True), approx=True)
        ctx_h = jnp.dot(p.astype(jnp.bfloat16), vh,
                        preferred_element_type=jnp.float32)            # (T, d)
        # fold the per-head slice of the output projection into the head loop
        o_acc = o_acc + jnp.dot(ctx_h.astype(jnp.bfloat16), wo[lo:hi, :],
                                preferred_element_type=jnp.float32)    # (T, E)
        if need_weights:
            w_acc = p if w_acc is None else w_acc + p

    y = o_acc + bo_ref[...] + res_ref[0]            # out-proj bias + residual (f32)
    mu = jnp.mean(y, axis=-1, keepdims=True)
    var = jnp.mean(jnp.square(y - mu), axis=-1, keepdims=True)
    out_refs[0][0] = (y - mu) * lax.rsqrt(var + 1e-5) * g_ref[...] + be_ref[...]
    if need_weights:
        out_refs[1][0] = w_acc * (1.0 / num_heads)   # head-mean attn probs (T, S)


def mha(q, kv, x_res, wo, bo, g, be, num_heads, need_weights):
    B, T, E = q.shape
    S = kv.shape[1]
    kern = functools.partial(_mha_kernel, num_heads=num_heads,
                             need_weights=need_weights)
    in_specs = [
        pl.BlockSpec((1, T, E), lambda b: (b, 0, 0)),       # q
        pl.BlockSpec((1, S, 2 * E), lambda b: (b, 0, 0)),   # k|v
        pl.BlockSpec((1, T, E), lambda b: (b, 0, 0)),       # residual x
        pl.BlockSpec((E, E), lambda b: (0, 0)),             # wo (resident)
        pl.BlockSpec((1, E), lambda b: (0, 0)),             # bo
        pl.BlockSpec((1, E), lambda b: (0, 0)),             # ln gamma
        pl.BlockSpec((1, E), lambda b: (0, 0)),             # ln beta
    ]
    out_shape = jax.ShapeDtypeStruct((B, T, E), jnp.float32)
    out_specs = pl.BlockSpec((1, T, E), lambda b: (b, 0, 0))
    if need_weights:
        out_shape = (out_shape, jax.ShapeDtypeStruct((B, T, S), jnp.float32))
        out_specs = (out_specs, pl.BlockSpec((1, T, S), lambda b: (b, 0, 0)))
    return pl.pallas_call(
        kern,
        out_shape=out_shape,
        grid=(B,),
        in_specs=in_specs,
        out_specs=out_specs,
        compiler_params=_cparams(("parallel",)),
    )(q, kv, x_res, wo, bo, g, be)


# ----------------------------------------------------------------------------
# Kernel 4: fused  add3 + fc1/relu/fc2 + residual + final LayerNorm
# ----------------------------------------------------------------------------
def _ffn_kernel(a_ref, b_ref, c_ref, w1_ref, b1_ref, w2_ref, b2_ref,
                g_ref, be_ref, o_ref):
    xs = a_ref[...] + b_ref[...] + c_ref[...]                    # (tm, E) f32
    h = jnp.dot(xs.astype(jnp.bfloat16), w1_ref[...],
                preferred_element_type=jnp.float32) + b1_ref[...]
    h = jnp.maximum(h, 0.0)
    y = jnp.dot(h.astype(jnp.bfloat16), w2_ref[...],
                preferred_element_type=jnp.float32) + b2_ref[...]
    y = y + xs                                                   # residual
    mu = jnp.mean(y, axis=-1, keepdims=True)
    var = jnp.mean(jnp.square(y - mu), axis=-1, keepdims=True)
    o_ref[...] = (y - mu) * lax.rsqrt(var + 1e-5) * g_ref[...] + be_ref[...]


def ffn_fused(a, b, c, w1, b1, w2, b2, g, be):
    M, E = a.shape
    F = w1.shape[1]
    tm = _row_tile(M)
    row = lambda i: (i, 0)
    full = lambda i: (0, 0)
    return pl.pallas_call(
        _ffn_kernel,
        out_shape=jax.ShapeDtypeStruct((M, E), jnp.float32),
        grid=(M // tm,),
        in_specs=[
            pl.BlockSpec((tm, E), row), pl.BlockSpec((tm, E), row),
            pl.BlockSpec((tm, E), row),
            pl.BlockSpec((E, F), full), pl.BlockSpec((1, F), full),
            pl.BlockSpec((F, E), full), pl.BlockSpec((1, E), full),
            pl.BlockSpec((1, E), full), pl.BlockSpec((1, E), full),
        ],
        out_specs=pl.BlockSpec((tm, E), row),
        compiler_params=_cparams(("parallel",)),
    )(a, b, c, w1, b1, w2, b2, g, be)


# ----------------------------------------------------------------------------
# TransformerDecoderLayerPhase2 forward (eval mode, normalize_before=False)
# ----------------------------------------------------------------------------
def decoder_layer_phase2_forward(x, encoder_out, decoder_out, params, num_heads):
    T, B, E = x.shape
    S_e = encoder_out.shape[0]
    S_d = decoder_out.shape[0]

    # batch-major internal layout (single boundary transpose each way)
    xb = jnp.transpose(x, (1, 0, 2))             # (B, T, E)
    encb = jnp.transpose(encoder_out, (1, 0, 2)) # (B, S_e, E)
    decb = jnp.transpose(decoder_out, (1, 0, 2)) # (B, S_d, E)

    M = B * T
    q_self, kv_self, q_enc, q_dec = x_projections(xb.reshape(M, E), params)
    q_self = q_self.reshape(B, T, E)
    kv_self = kv_self.reshape(B, T, 2 * E)
    q_enc = q_enc.reshape(B, T, E)
    q_dec = q_dec.reshape(B, T, E)

    kv_enc = linear(encb.reshape(B * S_e, E), params["w_kv_enc"],
                    params["b_kv_enc"]).reshape(B, S_e, 2 * E)
    kv_dec = linear(decb.reshape(B * S_d, E), params["w_kv_dec"],
                    params["b_kv_dec"]).reshape(B, S_d, 2 * E)

    # --- self-attention branch (reference passes un-normalized x as q/k/v) ----
    x_self = mha(q_self, kv_self, xb, params["wo_self"], params["bo_self"],
                 params["ln_self_g"], params["ln_self_b"], num_heads,
                 need_weights=False)

    # --- encoder attention branch --------------------------------------------
    # (reference computes need_weights=True here, but that attn is immediately
    #  overwritten by the decoder attention's weights, so we skip the writeback)
    x_enc = mha(q_enc, kv_enc, xb, params["wo_enc"], params["bo_enc"],
                params["ln_enc_g"], params["ln_enc_b"], num_heads,
                need_weights=False)

    # --- decoder (first-pass) attention branch --------------------------------
    # Reference quirk kept verbatim: this branch is normalized with
    # encoder_attn_layer_norm, not decoder_attn_layer_norm.
    x_dec, attn = mha(q_dec, kv_dec, xb, params["wo_dec"], params["bo_dec"],
                      params["ln_enc_g"], params["ln_enc_b"], num_heads,
                      need_weights=True)

    # --- combine + FFN + final LayerNorm (single fused kernel) ----------------
    out_flat = ffn_fused(x_self.reshape(M, E), x_enc.reshape(M, E),
                         x_dec.reshape(M, E),
                         params["fc1_w"], params["fc1_b"],
                         params["fc2_w"], params["fc2_b"],
                         params["ln_final_g"], params["ln_final_b"])
    out = out_flat.reshape(B, T, E).transpose(1, 0, 2)   # back to (T, B, E)

    # TODO(synk): dropout / key-padding / causal masks and incremental_state are
    # runtime no-ops here (eval mode, masks passed as None in the default call).
    return out, attn


# ----------------------------------------------------------------------------
# deterministic parameter construction (torch-like raw params, then fused/bf16)
# ----------------------------------------------------------------------------
def _init_mha_raw(key, E, scale=0.1):
    ks = jax.random.split(key, 4)
    w = lambda k: jax.random.normal(k, (E, E), jnp.float32) * scale
    return {
        "wq": w(ks[0]), "bq": jnp.zeros((1, E), jnp.float32),
        "wk": w(ks[1]), "bk": jnp.zeros((1, E), jnp.float32),
        "wv": w(ks[2]), "bv": jnp.zeros((1, E), jnp.float32),
        "wo": w(ks[3]), "bo": jnp.zeros((1, E), jnp.float32),
    }


def init_raw_params(key, E, F):
    ks = jax.random.split(key, 6)
    return {
        "self_attn": _init_mha_raw(ks[0], E),
        "encoder_attn": _init_mha_raw(ks[1], E),
        "decoder_attn": _init_mha_raw(ks[2], E),
        "ln_self_g": jnp.ones((1, E), jnp.float32),
        "ln_self_b": jnp.zeros((1, E), jnp.float32),
        "ln_enc_g": jnp.ones((1, E), jnp.float32),
        "ln_enc_b": jnp.zeros((1, E), jnp.float32),
        "ln_dec_g": jnp.ones((1, E), jnp.float32),   # present in module; unused by its forward
        "ln_dec_b": jnp.zeros((1, E), jnp.float32),
        "ln_final_g": jnp.ones((1, E), jnp.float32),
        "ln_final_b": jnp.zeros((1, E), jnp.float32),
        "fc1_w": jax.random.normal(ks[3], (E, F), jnp.float32) * 0.1,
        "fc1_b": jnp.zeros((1, F), jnp.float32),
        "fc2_w": jax.random.normal(ks[4], (F, E), jnp.float32) * 0.1,
        "fc2_b": jnp.zeros((1, E), jnp.float32),
    }


def prepare_params(raw, E, num_heads):
    """Fuse K|V projections, fold the softmax scale into q, cast weights to bf16."""
    d = E // num_heads
    scale = float(d) ** -0.5
    bf16, f32 = jnp.bfloat16, jnp.float32
    p = {}
    for name, att in (("self", raw["self_attn"]),
                      ("enc", raw["encoder_attn"]),
                      ("dec", raw["decoder_attn"])):
        p[f"wq_{name}"] = (att["wq"] * scale).astype(bf16)
        p[f"bq_{name}"] = (att["bq"] * scale).astype(f32)
        p[f"w_kv_{name}"] = jnp.concatenate([att["wk"], att["wv"]], axis=1).astype(bf16)
        p[f"b_kv_{name}"] = jnp.concatenate([att["bk"], att["bv"]], axis=1).astype(f32)
        p[f"wo_{name}"] = att["wo"].astype(bf16)
        p[f"bo_{name}"] = att["bo"].astype(f32)
    for k in ("ln_self_g", "ln_self_b", "ln_enc_g", "ln_enc_b",
              "ln_final_g", "ln_final_b", "fc1_b", "fc2_b"):
        p[k] = raw[k].astype(f32)
    p["fc1_w"] = raw["fc1_w"].astype(bf16)
    p["fc2_w"] = raw["fc2_w"].astype(bf16)
    return p


if __name__ == "__main__":
    T, B, E, H, FFN = 8, 2, 32, 4, 64       # tgt_len, batch, embed, heads, ffn dim
    S_ENC, S_DEC = 8, 8                     # encoder / first-pass-decoder lengths

    key = jax.random.PRNGKey(0)
    k_x, k_e, k_d, k_p = jax.random.split(key, 4)
    x = jax.random.normal(k_x, (T, B, E), jnp.float32)
    encoder_out = jax.random.normal(k_e, (S_ENC, B, E), jnp.float32)
    decoder_out = jax.random.normal(k_d, (S_DEC, B, E), jnp.float32)

    raw = init_raw_params(k_p, E, FFN)
    params = prepare_params(raw, E, H)

    fwd = jax.jit(decoder_layer_phase2_forward, static_argnames="num_heads")
    out, attn = fwd(x, encoder_out, decoder_out, params, num_heads=H)
    out = jax.block_until_ready(out)
    attn = jax.block_until_ready(attn)

    assert out.shape == (T, B, E)
    assert attn.shape == (B, T, S_DEC)
    assert bool(jnp.all(jnp.isfinite(out))) and bool(jnp.all(jnp.isfinite(attn)))
    print("KERNEL_OK")
</pallas_src>

<mosaic_0001>
module attributes {stable_mosaic.version = 11 : i64} {
  func.func @_x_proj_kernel(%arg0: i32, %arg1: memref<16x32xf32, #tpu.memory_space<vmem>>, %arg2: memref<32x32xbf16, #tpu.memory_space<vmem>>, %arg3: memref<1x32xf32, #tpu.memory_space<vmem>>, %arg4: memref<32x64xbf16, #tpu.memory_space<vmem>>, %arg5: memref<1x64xf32, #tpu.memory_space<vmem>>, %arg6: memref<32x32xbf16, #tpu.memory_space<vmem>>, %arg7: memref<1x32xf32, #tpu.memory_space<vmem>>, %arg8: memref<32x32xbf16, #tpu.memory_space<vmem>>, %arg9: memref<1x32xf32, #tpu.memory_space<vmem>>, %arg10: memref<16x32xbf16, #tpu.memory_space<vmem>>, %arg11: memref<16x64xbf16, #tpu.memory_space<vmem>>, %arg12: memref<16x32xbf16, #tpu.memory_space<vmem>>, %arg13: memref<16x32xbf16, #tpu.memory_space<vmem>>) attributes {dimension_semantics = [#tpu.dimension_semantics<parallel>], iteration_bounds = array<i64: 1>, scalar_prefetch = 0 : i64, scratch_operands = 0 : i64, tpu.core_type = #tpu.core_type<tc>, window_params = [{transform_indices = @transform_0, window_bounds = array<i64: 16, 32>}, {pipeline_mode = #tpu.pipeline_mode<synchronous>, transform_indices = @transform_1, window_bounds = array<i64: 32, 32>}, {pipeline_mode = #tpu.pipeline_mode<synchronous>, transform_indices = @transform_2, window_bounds = array<i64: 1, 32>}, {pipeline_mode = #tpu.pipeline_mode<synchronous>, transform_indices = @transform_3, window_bounds = array<i64: 32, 64>}, {pipeline_mode = #tpu.pipeline_mode<synchronous>, transform_indices = @transform_4, window_bounds = array<i64: 1, 64>}, {pipeline_mode = #tpu.pipeline_mode<synchronous>, transform_indices = @transform_5, window_bounds = array<i64: 32, 32>}, {pipeline_mode = #tpu.pipeline_mode<synchronous>, transform_indices = @transform_6, window_bounds = array<i64: 1, 32>}, {pipeline_mode = #tpu.pipeline_mode<synchronous>, transform_indices = @transform_7, window_bounds = array<i64: 32, 32>}, {pipeline_mode = #tpu.pipeline_mode<synchronous>, transform_indices = @transform_8, window_bounds = array<i64: 1, 32>}, {transform_indices = @transform_9, window_bounds = array<i64: 16, 32>}, {transform_indices = @transform_10, window_bounds = array<i64: 16, 64>}, {transform_indices = @transform_11, window_bounds = array<i64: 16, 32>}, {transform_indices = @transform_12, window_bounds = array<i64: 16, 32>}]} {
    %c0 = arith.constant 0 : index
    %c0_0 = arith.constant 0 : index
    %0 = vector.load %arg1[%c0, %c0_0] : memref<16x32xf32, #tpu.memory_space<vmem>>, vector<16x32xf32>
    %1 = arith.truncf %0 : vector<16x32xf32> to vector<16x32xbf16>
    %c0_1 = arith.constant 0 : index
    %c0_2 = arith.constant 0 : index
    %2 = vector.load %arg2[%c0_1, %c0_2] : memref<32x32xbf16, #tpu.memory_space<vmem>>, vector<32x32xbf16>
    %cst = arith.constant dense<0.000000e+00> : vector<16x32xf32>
    %3 = tpu.matmul %1, %2, %cst {dimension_numbers = #tpu.dot_dimension_numbers<[1], [0], [0], [1], [0, 0, 1, 1], [], []>} : vector<16x32xbf16>, vector<32x32xbf16>, vector<16x32xf32> -> vector<16x32xf32>
    %c0_3 = arith.constant 0 : index
    %c0_4 = arith.constant 0 : index
    %4 = vector.load %arg3[%c0_3, %c0_4] : memref<1x32xf32, #tpu.memory_space<vmem>>, vector<1x32xf32>
    %5 = vector.broadcast %4 : vector<1x32xf32> to vector<16x32xf32>
    %6 = arith.addf %3, %5 : vector<16x32xf32>
    %7 = arith.truncf %6 : vector<16x32xf32> to vector<16x32xbf16>
    %c0_5 = arith.constant 0 : index
    %c0_6 = arith.constant 0 : index
    %8 = vector.load %arg10[%c0_5, %c0_6] : memref<16x32xbf16, #tpu.memory_space<vmem>>, vector<16x32xbf16>
    tpu.vector_store %arg10[%c0_5, %c0_6], %7 {strides = array<i32>} : memref<16x32xbf16, #tpu.memory_space<vmem>>, vector<16x32xbf16>,
    %c0_7 = arith.constant 0 : index
    %c0_8 = arith.constant 0 : index
    %9 = vector.load %arg4[%c0_7, %c0_8] : memref<32x64xbf16, #tpu.memory_space<vmem>>, vector<32x64xbf16>
    %cst_9 = arith.constant dense<0.000000e+00> : vector<16x64xf32>
    %10 = tpu.matmul %1, %9, %cst_9 {dimension_numbers = #tpu.dot_dimension_numbers<[1], [0], [0], [1], [0, 0, 1, 1], [], []>} : vector<16x32xbf16>, vector<32x64xbf16>, vector<16x64xf32> -> vector<16x64xf32>
    %c0_10 = arith.constant 0 : index
    %c0_11 = arith.constant 0 : index
    %11 = vector.load %arg5[%c0_10, %c0_11] : memref<1x64xf32, #tpu.memory_space<vmem>>, vector<1x64xf32>
    %12 = vector.broadcast %11 : vector<1x64xf32> to vector<16x64xf32>
    %13 = arith.addf %10, %12 : vector<16x64xf32>
    %14 = arith.truncf %13 : vector<16x64xf32> to vector<16x64xbf16>
    %c0_12 = arith.constant 0 : index
    %c0_13 = arith.constant 0 : index
    %15 = vector.load %arg11[%c0_12, %c0_13] : memref<16x64xbf16, #tpu.memory_space<vmem>>, vector<16x64xbf16>
    tpu.vector_store %arg11[%c0_12, %c0_13], %14 {strides = array<i32>} : memref<16x64xbf16, #tpu.memory_space<vmem>>, vector<16x64xbf16>,
    %c0_14 = arith.constant 0 : index
    %c0_15 = arith.constant 0 : index
    %16 = vector.load %arg6[%c0_14, %c0_15] : memref<32x32xbf16, #tpu.memory_space<vmem>>, vector<32x32xbf16>
    %cst_16 = arith.constant dense<0.000000e+00> : vector<16x32xf32>
    %17 = tpu.matmul %1, %16, %cst_16 {dimension_numbers = #tpu.dot_dimension_numbers<[1], [0], [0], [1], [0, 0, 1, 1], [], []>} : vector<16x32xbf16>, vector<32x32xbf16>, vector<16x32xf32> -> vector<16x32xf32>
    %c0_17 = arith.constant 0 : index
    %c0_18 = arith.constant 0 : index
    %18 = vector.load %arg7[%c0_17, %c0_18] : memref<1x32xf32, #tpu.memory_space<vmem>>, vector<1x32xf32>
    %19 = vector.broadcast %18 : vector<1x32xf32> to vector<16x32xf32>
    %20 = arith.addf %17, %19 : vector<16x32xf32>
    %21 = arith.truncf %20 : vector<16x32xf32> to vector<16x32xbf16>
    %c0_19 = arith.constant 0 : index
    %c0_20 = arith.constant 0 : index
    %22 = vector.load %arg12[%c0_19, %c0_20] : memref<16x32xbf16, #tpu.memory_space<vmem>>, vector<16x32xbf16>
    tpu.vector_store %arg12[%c0_19, %c0_20], %21 {strides = array<i32>} : memref<16x32xbf16, #tpu.memory_space<vmem>>, vector<16x32xbf16>,
    %c0_21 = arith.constant 0 : index
    %c0_22 = arith.constant 0 : index
    %23 = vector.load %arg8[%c0_21, %c0_22] : memref<32x32xbf16, #tpu.memory_space<vmem>>, vector<32x32xbf16>
    %cst_23 = arith.constant dense<0.000000e+00> : vector<16x32xf32>
    %24 = tpu.matmul %1, %23, %cst_23 {dimension_numbers = #tpu.dot_dimension_numbers<[1], [0], [0], [1], [0, 0, 1, 1], [], []>} : vector<16x32xbf16>, vector<32x32xbf16>, vector<16x32xf32> -> vector<16x32xf32>
    %c0_24 = arith.constant 0 : index
    %c0_25 = arith.constant 0 : index
    %25 = vector.load %arg9[%c0_24, %c0_25] : memref<1x32xf32, #tpu.memory_space<vmem>>, vector<1x32xf32>
    %26 = vector.broadcast %25 : vector<1x32xf32> to vector<16x32xf32>
    %27 = arith.addf %24, %26 : vector<16x32xf32>
    %28 = arith.truncf %27 : vector<16x32xf32> to vector<16x32xbf16>
    %c0_26 = arith.constant 0 : index
    %c0_27 = arith.constant 0 : index
    %29 = vector.load %arg13[%c0_26, %c0_27] : memref<16x32xbf16, #tpu.memory_space<vmem>>, vector<16x32xbf16>
    tpu.vector_store %arg13[%c0_26, %c0_27], %28 {strides = array<i32>} : memref<16x32xbf16, #tpu.memory_space<vmem>>, vector<16x32xbf16>,
    return
  }
  func.func @transform_0(%arg0: i32) -> (i32, i32) {
    %c0_i32 = arith.constant 0 : i32
    %c0_i32_0 = arith.constant 0 : i32
    return %arg0, %c0_i32 : i32, i32
  }
  func.func @transform_1(%arg0: i32) -> (i32, i32) {
    %c0_i32 = arith.constant 0 : i32
    %c0_i32_0 = arith.constant 0 : i32
    %c0_i32_1 = arith.constant 0 : i32
    return %c0_i32, %c0_i32_0 : i32, i32
  }
  func.func @transform_2(%arg0: i32) -> (i32, i32) {
    %c0_i32 = arith.constant 0 : i32
    %c0_i32_0 = arith.constant 0 : i32
    %c0_i32_1 = arith.constant 0 : i32
    return %c0_i32, %c0_i32_0 : i32, i32
  }
  func.func @transform_3(%arg0: i32) -> (i32, i32) {
    %c0_i32 = arith.constant 0 : i32
    %c0_i32_0 = arith.constant 0 : i32
    %c0_i32_1 = arith.constant 0 : i32
    return %c0_i32, %c0_i32_0 : i32, i32
  }
  func.func @transform_4(%arg0: i32) -> (i32, i32) {
    %c0_i32 = arith.constant 0 : i32
    %c0_i32_0 = arith.constant 0 : i32
    %c0_i32_1 = arith.constant 0 : i32
    return %c0_i32, %c0_i32_0 : i32, i32
  }
  func.func @transform_5(%arg0: i32) -> (i32, i32) {
    %c0_i32 = arith.constant 0 : i32
    %c0_i32_0 = arith.constant 0 : i32
    %c0_i32_1 = arith.constant 0 : i32
    return %c0_i32, %c0_i32_0 : i32, i32
  }
  func.func @transform_6(%arg0: i32) -> (i32, i32) {
    %c0_i32 = arith.constant 0 : i32
    %c0_i32_0 = arith.constant 0 : i32
    %c0_i32_1 = arith.constant 0 : i32
    return %c0_i32, %c0_i32_0 : i32, i32
  }
  func.func @transform_7(%arg0: i32) -> (i32, i32) {
    %c0_i32 = arith.constant 0 : i32
    %c0_i32_0 = arith.constant 0 : i32
    %c0_i32_1 = arith.constant 0 : i32
    return %c0_i32, %c0_i32_0 : i32, i32
  }
  func.func @transform_8(%arg0: i32) -> (i32, i32) {
    %c0_i32 = arith.constant 0 : i32
    %c0_i32_0 = arith.constant 0 : i32
    %c0_i32_1 = arith.constant 0 : i32
    return %c0_i32, %c0_i32_0 : i32, i32
  }
  func.func @transform_9(%arg0: i32) -> (i32, i32) {
    %c0_i32 = arith.constant 0 : i32
    %c0_i32_0 = arith.constant 0 : i32
    return %arg0, %c0_i32 : i32, i32
  }
  func.func @transform_10(%arg0: i32) -> (i32, i32) {
    %c0_i32 = arith.constant 0 : i32
    %c0_i32_0 = arith.constant 0 : i32
    return %arg0, %c0_i32 : i32, i32
  }
  func.func @transform_11(%arg0: i32) -> (i32, i32) {
    %c0_i32 = arith.constant 0 : i32
    %c0_i32_0 = arith.constant 0 : i32
    return %arg0, %c0_i32 : i32, i32
  }
  func.func @transform_12(%arg0: i32) -> (i32, i32) {
    %c0_i32 = arith.constant 0 : i32
    %c0_i32_0 = arith.constant 0 : i32
    return %arg0, %c0_i32 : i32, i32
  }
}

module attributes {stable_mosaic.version = 11 : i64} {
  func.func @_mha_kernel(%arg0: i32, %arg1: memref<1x8x32xbf16, #tpu.memory_space<vmem>>, %arg2: memref<1x8x64xbf16, #tpu.memory_space<vmem>>, %arg3: memref<1x8x32xf32, #tpu.memory_space<vmem>>, %arg4: memref<32x32xbf16, #tpu.memory_space<vmem>>, %arg5: memref<1x32xf32, #tpu.memory_space<vmem>>, %arg6: memref<1x32xf32, #tpu.memory_space<vmem>>, %arg7: memref<1x32xf32, #tpu.memory_space<vmem>>, %arg8: memref<1x8x32xf32, #tpu.memory_space<vmem>>) attributes {dimension_semantics = [#tpu.dimension_semantics<parallel>], iteration_bounds = array<i64: 2>, scalar_prefetch = 0 : i64, scratch_operands = 0 : i64, tpu.core_type = #tpu.core_type<tc>, window_params = [{transform_indices = @transform_0, window_bounds = array<i64: 1, 8, 32>}, {transform_indices = @transform_1, window_bounds = array<i64: 1, 8, 64>}, {transform_indices = @transform_2, window_bounds = array<i64: 1, 8, 32>}, {pipeline_mode = #tpu.pipeline_mode<synchronous>, transform_indices = @transform_3, window_bounds = array<i64: 32, 32>}, {pipeline_mode = #tpu.pipeline_mode<synchronous>, transform_indices = @transform_4, window_bounds = array<i64: 1, 32>}, {pipeline_mode = #tpu.pipeline_mode<synchronous>, transform_indices = @transform_5, window_bounds = array<i64: 1, 32>}, {pipeline_mode = #tpu.pipeline_mode<synchronous>, transform_indices = @transform_6, window_bounds = array<i64: 1, 32>}, {transform_indices = @transform_7, window_bounds = array<i64: 1, 8, 32>}]} {
    %c0 = arith.constant 0 : index
    %c0_0 = arith.constant 0 : index
    %c0_1 = arith.constant 0 : index
    %0 = vector.load %arg1[%c0, %c0_0, %c0_1] : memref<1x8x32xbf16, #tpu.memory_space<vmem>>, vector<1x8x32xbf16>
    %1 = vector.shape_cast %0 : vector<1x8x32xbf16> to vector<8x32xbf16>
    %c0_2 = arith.constant 0 : index
    %c0_3 = arith.constant 0 : index
    %c0_4 = arith.constant 0 : index
    %2 = vector.load %arg2[%c0_2, %c0_3, %c0_4] : memref<1x8x64xbf16, #tpu.memory_space<vmem>>, vector<1x8x64xbf16>
    %3 = vector.shape_cast %2 : vector<1x8x64xbf16> to vector<8x64xbf16>
    %4 = vector.extract_strided_slice %3 {offsets = [0, 0], sizes = [8, 32], strides = [1, 1]} : vector<8x64xbf16> to vector<8x32xbf16>
    %5 = vector.extract_strided_slice %3 {offsets = [0, 32], sizes = [8, 32], strides = [1, 1]} : vector<8x64xbf16> to vector<8x32xbf16>
    %c0_5 = arith.constant 0 : index
    %c0_6 = arith.constant 0 : index
    %6 = vector.load %arg4[%c0_5, %c0_6] : memref<32x32xbf16, #tpu.memory_space<vmem>>, vector<32x32xbf16>
    %cst = arith.constant 0.000000e+00 : f32
    %7 = vector.broadcast %cst : f32 to vector<8x32xf32>
    %8 = vector.extract_strided_slice %1 {offsets = [0, 0], sizes = [8, 8], strides = [1, 1]} : vector<8x32xbf16> to vector<8x8xbf16>
    %9 = vector.extract_strided_slice %4 {offsets = [0, 0], sizes = [8, 8], strides = [1, 1]} : vector<8x32xbf16> to vector<8x8xbf16>
    %10 = vector.extract_strided_slice %5 {offsets = [0, 0], sizes = [8, 8], strides = [1, 1]} : vector<8x32xbf16> to vector<8x8xbf16>
    %cst_7 = arith.constant dense<0.000000e+00> : vector<8x8xf32>
    %11 = tpu.matmul %8, %9, %cst_7 {dimension_numbers = #tpu.dot_dimension_numbers<[1], [1], [0], [0], [0, 0, 1, 0], [], []>} : vector<8x8xbf16>, vector<8x8xbf16>, vector<8x8xf32> -> vector<8x8xf32>
    %cst_8 = arith.constant dense<0xFF800000> : vector<8xf32>
    %12 = vector.multi_reduction <maximumf>, %11, %cst_8 [1] : vector<8x8xf32> to vector<8xf32>
    %13 = vector.shape_cast %12 : vector<8xf32> to vector<8x1xf32>
    %14 = vector.broadcast %13 : vector<8x1xf32> to vector<8x8xf32>
    %15 = arith.subf %11, %14 : vector<8x8xf32>
    %16 = math.exp %15 : vector<8x8xf32>
    %cst_9 = arith.constant dense<0.000000e+00> : vector<8xf32>
    %17 = vector.multi_reduction <add>, %16, %cst_9 [1] : vector<8x8xf32> to vector<8xf32>
    %18 = vector.shape_cast %17 : vector<8xf32> to vector<8x1xf32>
    %19 = tpu.reciprocal %18 {approx = true} : vector<8x1xf32> -> vector<8x1xf32>
    %20 = vector.broadcast %19 : vector<8x1xf32> to vector<8x8xf32>
    %21 = arith.mulf %16, %20 : vector<8x8xf32>
    %22 = arith.truncf %21 : vector<8x8xf32> to vector<8x8xbf16>
    %cst_10 = arith.constant dense<0.000000e+00> : vector<8x8xf32>
    %23 = tpu.matmul %22, %10, %cst_10 {dimension_numbers = #tpu.dot_dimension_numbers<[1], [0], [0], [1], [0, 0, 1, 1], [], []>} : vector<8x8xbf16>, vector<8x8xbf16>, vector<8x8xf32> -> vector<8x8xf32>
    %24 = arith.truncf %23 : vector<8x8xf32> to vector<8x8xbf16>
    %25 = vector.extract_strided_slice %6 {offsets = [0, 0], sizes = [8, 32], strides = [1, 1]} : vector<32x32xbf16> to vector<8x32xbf16>
    %cst_11 = arith.constant dense<0.000000e+00> : vector<8x32xf32>
    %26 = tpu.matmul %24, %25, %cst_11 {dimension_numbers = #tpu.dot_dimension_numbers<[1], [0], [0], [1], [0, 0, 1, 1], [], []>} : vector<8x8xbf16>, vector<8x32xbf16>, vector<8x32xf32> -> vector<8x32xf32>
    %27 = arith.addf %7, %26 : vector<8x32xf32>
    %28 = vector.extract_strided_slice %1 {offsets = [0, 8], sizes = [8, 8], strides = [1, 1]} : vector<8x32xbf16> to vector<8x8xbf16>
    %29 = vector.extract_strided_slice %4 {offsets = [0, 8], sizes = [8, 8], strides = [1, 1]} : vector<8x32xbf16> to vector<8x8xbf16>
    %30 = vector.extract_strided_slice %5 {offsets = [0, 8], sizes = [8, 8], strides = [1, 1]} : vector<8x32xbf16> to vector<8x8xbf16>
    %cst_12 = arith.constant dense<0.000000e+00> : vector<8x8xf32>
    %31 = tpu.matmul %28, %29, %cst_12 {dimension_numbers = #tpu.dot_dimension_numbers<[1], [1], [0], [0], [0, 0, 1, 0], [], []>} : vector<8x8xbf16>, vector<8x8xbf16>, vector<8x8xf32> -> vector<8x8xf32>
    %cst_13 = arith.constant dense<0xFF800000> : vector<8xf32>
    %32 = vector.multi_reduction <maximumf>, %31, %cst_13 [1] : vector<8x8xf32> to vector<8xf32>
    %33 = vector.shape_cast %32 : vector<8xf32> to vector<8x1xf32>
    %34 = vector.broadcast %33 : vector<8x1xf32> to vector<8x8xf32>
    %35 = arith.subf %31, %34 : vector<8x8xf32>
    %36 = math.exp %35 : vector<8x8xf32>
    %cst_14 = arith.constant dense<0.000000e+00> : vector<8xf32>
    %37 = vector.multi_reduction <add>, %36, %cst_14 [1] : vector<8x8xf32> to vector<8xf32>
    %38 = vector.shape_cast %37 : vector<8xf32> to vector<8x1xf32>
    %39 = tpu.reciprocal %38 {approx = true} : vector<8x1xf32> -> vector<8x1xf32>
    %40 = vector.broadcast %39 : vector<8x1xf32> to vector<8x8xf32>
    %41 = arith.mulf %36, %40 : vector<8x8xf32>
    %42 = arith.truncf %41 : vector<8x8xf32> to vector<8x8xbf16>
    %cst_15 = arith.constant dense<0.000000e+00> : vector<8x8xf32>
    %43 = tpu.matmul %42, %30, %cst_15 {dimension_numbers = #tpu.dot_dimension_numbers<[1], [0], [0], [1], [0, 0, 1, 1], [], []>} : vector<8x8xbf16>, vector<8x8xbf16>, vector<8x8xf32> -> vector<8x8xf32>
    %44 = arith.truncf %43 : vector<8x8xf32> to vector<8x8xbf16>
    %45 = vector.extract_strided_slice %6 {offsets = [8, 0], sizes = [8, 32], strides = [1, 1]} : vector<32x32xbf16> to vector<8x32xbf16>
    %cst_16 = arith.constant dense<0.000000e+00> : vector<8x32xf32>
    %46 = tpu.matmul %44, %45, %cst_16 {dimension_numbers = #tpu.dot_dimension_numbers<[1], [0], [0], [1], [0, 0, 1, 1], [], []>} : vector<8x8xbf16>, vector<8x32xbf16>, vector<8x32xf32> -> vector<8x32xf32>
    %47 = arith.addf %27, %46 : vector<8x32xf32>
    %48 = vector.extract_strided_slice %1 {offsets = [0, 16], sizes = [8, 8], strides = [1, 1]} : vector<8x32xbf16> to vector<8x8xbf16>
    %49 = vector.extract_strided_slice %4 {offsets = [0, 16], sizes = [8, 8], strides = [1, 1]} : vector<8x32xbf16> to vector<8x8xbf16>
    %50 = vector.extract_strided_slice %5 {offsets = [0, 16], sizes = [8, 8], strides = [1, 1]} : vector<8x32xbf16> to vector<8x8xbf16>
    %cst_17 = arith.constant dense<0.000000e+00> : vector<8x8xf32>
    %51 = tpu.matmul %48, %49, %cst_17 {dimension_numbers = #tpu.dot_dimension_numbers<[1], [1], [0], [0], [0, 0, 1, 0], [], []>} : vector<8x8xbf16>, vector<8x8xbf16>, vector<8x8xf32> -> vector<8x8xf32>
    %cst_18 = arith.constant dense<0xFF800000> : vector<8xf32>
    %52 = vector.multi_reduction <maximumf>, %51, %cst_18 [1] : vector<8x8xf32> to vector<8xf32>
    %53 = vector.shape_cast %52 : vector<8xf32> to vector<8x1xf32>
    %54 = vector.broadcast %53 : vector<8x1xf32> to vector<8x8xf32>
    %55 = arith.subf %51, %54 : vector<8x8xf32>
    %56 = math.exp %55 : vector<8x8xf32>
    %cst_19 = arith.constant dense<0.000000e+00> : vector<8xf32>
    %57 = vector.multi_reduction <add>, %56, %cst_19 [1] : vector<8x8xf32> to vector<8xf32>
    %58 = vector.shape_cast %57 : vector<8xf32> to vector<8x1xf32>
    %59 = tpu.reciprocal %58 {approx = true} : vector<8x1xf32> -> vector<8x1xf32>
    %60 = vector.broadcast %59 : vector<8x1xf32> to vector<8x8xf32>
    %61 = arith.mulf %56, %60 : vector<8x8xf32>
    %62 = arith.truncf %61 : vector<8x8xf32> to vector<8x8xbf16>
    %cst_20 = arith.constant dense<0.000000e+00> : vector<8x8xf32>
    %63 = tpu.matmul %62, %50, %cst_20 {dimension_numbers = #tpu.dot_dimension_numbers<[1], [0], [0], [1], [0, 0, 1, 1], [], []>} : vector<8x8xbf16>, vector<8x8xbf16>, vector<8x8xf32> -> vector<8x8xf32>
    %64 = arith.truncf %63 : vector<8x8xf32> to vector<8x8xbf16>
    %65 = vector.extract_strided_slice %6 {offsets = [16, 0], sizes = [8, 32], strides = [1, 1]} : vector<32x32xbf16> to vector<8x32xbf16>
    %cst_21 = arith.constant dense<0.000000e+00> : vector<8x32xf32>
    %66 = tpu.matmul %64, %65, %cst_21 {dimension_numbers = #tpu.dot_dimension_numbers<[1], [0], [0], [1], [0, 0, 1, 1], [], []>} : vector<8x8xbf16>, vector<8x32xbf16>, vector<8x32xf32> -> vector<8x32xf32>
    %67 = arith.addf %47, %66 : vector<8x32xf32>
    %68 = vector.extract_strided_slice %1 {offsets = [0, 24], sizes = [8, 8], strides = [1, 1]} : vector<8x32xbf16> to vector<8x8xbf16>
    %69 = vector.extract_strided_slice %4 {offsets = [0, 24], sizes = [8, 8], strides = [1, 1]} : vector<8x32xbf16> to vector<8x8xbf16>
    %70 = vector.extract_strided_slice %5 {offsets = [0, 24], sizes = [8, 8], strides = [1, 1]} : vector<8x32xbf16> to vector<8x8xbf16>
    %cst_22 = arith.constant dense<0.000000e+00> : vector<8x8xf32>
    %71 = tpu.matmul %68, %69, %cst_22 {dimension_numbers = #tpu.dot_dimension_numbers<[1], [1], [0], [0], [0, 0, 1, 0], [], []>} : vector<8x8xbf16>, vector<8x8xbf16>, vector<8x8xf32> -> vector<8x8xf32>
    %cst_23 = arith.constant dense<0xFF800000> : vector<8xf32>
    %72 = vector.multi_reduction <maximumf>, %71, %cst_23 [1] : vector<8x8xf32> to vector<8xf32>
    %73 = vector.shape_cast %72 : vector<8xf32> to vector<8x1xf32>
    %74 = vector.broadcast %73 : vector<8x1xf32> to vector<8x8xf32>
    %75 = arith.subf %71, %74 : vector<8x8xf32>
    %76 = math.exp %75 : vector<8x8xf32>
    %cst_24 = arith.constant dense<0.000000e+00> : vector<8xf32>
    %77 = vector.multi_reduction <add>, %76, %cst_24 [1] : vector<8x8xf32> to vector<8xf32>
    %78 = vector.shape_cast %77 : vector<8xf32> to vector<8x1xf32>
    %79 = tpu.reciprocal %78 {approx = true} : vector<8x1xf32> -> vector<8x1xf32>
    %80 = vector.broadcast %79 : vector<8x1xf32> to vector<8x8xf32>
    %81 = arith.mulf %76, %80 : vector<8x8xf32>
    %82 = arith.truncf %81 : vector<8x8xf32> to vector<8x8xbf16>
    %cst_25 = arith.constant dense<0.000000e+00> : vector<8x8xf32>
    %83 = tpu.matmul %82, %70, %cst_25 {dimension_numbers = #tpu.dot_dimension_numbers<[1], [0], [0], [1], [0, 0, 1, 1], [], []>} : vector<8x8xbf16>, vector<8x8xbf16>, vector<8x8xf32> -> vector<8x8xf32>
    %84 = arith.truncf %83 : vector<8x8xf32> to vector<8x8xbf16>
    %85 = vector.extract_strided_slice %6 {offsets = [24, 0], sizes = [8, 32], strides = [1, 1]} : vector<32x32xbf16> to vector<8x32xbf16>
    %cst_26 = arith.constant dense<0.000000e+00> : vector<8x32xf32>
    %86 = tpu.matmul %84, %85, %cst_26 {dimension_numbers = #tpu.dot_dimension_numbers<[1], [0], [0], [1], [0, 0, 1, 1], [], []>} : vector<8x8xbf16>, vector<8x32xbf16>, vector<8x32xf32> -> vector<8x32xf32>
    %87 = arith.addf %67, %86 : vector<8x32xf32>
    %c0_27 = arith.constant 0 : index
    %c0_28 = arith.constant 0 : index
    %88 = vector.load %arg5[%c0_27, %c0_28] : memref<1x32xf32, #tpu.memory_space<vmem>>, vector<1x32xf32>
    %89 = vector.broadcast %88 : vector<1x32xf32> to vector<8x32xf32>
    %90 = arith.addf %87, %89 : vector<8x32xf32>
    %c0_29 = arith.constant 0 : index
    %c0_30 = arith.constant 0 : index
    %c0_31 = arith.constant 0 : index
    %91 = vector.load %arg3[%c0_29, %c0_30, %c0_31] : memref<1x8x32xf32, #tpu.memory_space<vmem>>, vector<1x8x32xf32>
    %92 = vector.shape_cast %91 : vector<1x8x32xf32> to vector<8x32xf32>
    %93 = arith.addf %90, %92 : vector<8x32xf32>
    %cst_32 = arith.constant dense<0.000000e+00> : vector<8xf32>
    %94 = vector.multi_reduction <add>, %93, %cst_32 [1] : vector<8x32xf32> to vector<8xf32>
    %95 = vector.shape_cast %94 : vector<8xf32> to vector<8x1xf32>
    %cst_33 = arith.constant 3.200000e+01 : f32
    %96 = vector.broadcast %cst_33 : f32 to vector<8x1xf32>
    %97 = arith.divf %95, %96 : vector<8x1xf32>
    %98 = vector.broadcast %97 : vector<8x1xf32> to vector<8x32xf32>
    %99 = arith.subf %93, %98 : vector<8x32xf32>
    %100 = arith.mulf %99, %99 : vector<8x32xf32>
    %cst_34 = arith.constant dense<0.000000e+00> : vector<8xf32>
    %101 = vector.multi_reduction <add>, %100, %cst_34 [1] : vector<8x32xf32> to vector<8xf32>
    %102 = vector.shape_cast %101 : vector<8xf32> to vector<8x1xf32>
    %cst_35 = arith.constant 3.200000e+01 : f32
    %103 = vector.broadcast %cst_35 : f32 to vector<8x1xf32>
    %104 = arith.divf %102, %103 : vector<8x1xf32>
    %105 = vector.broadcast %97 : vector<8x1xf32> to vector<8x32xf32>
    %106 = arith.subf %93, %105 : vector<8x32xf32>
    %cst_36 = arith.constant 9.99999974E-6 : f32
    %107 = vector.broadcast %cst_36 : f32 to vector<8x1xf32>
    %108 = arith.addf %104, %107 : vector<8x1xf32>
    %109 = math.rsqrt %108 : vector<8x1xf32>
    %110 = vector.broadcast %109 : vector<8x1xf32> to vector<8x32xf32>
    %111 = arith.mulf %106, %110 : vector<8x32xf32>
    %c0_37 = arith.constant 0 : index
    %c0_38 = arith.constant 0 : index
    %112 = vector.load %arg6[%c0_37, %c0_38] : memref<1x32xf32, #tpu.memory_space<vmem>>, vector<1x32xf32>
    %113 = vector.broadcast %112 : vector<1x32xf32> to vector<8x32xf32>
    %114 = arith.mulf %111, %113 : vector<8x32xf32>
    %c0_39 = arith.constant 0 : index
    %c0_40 = arith.constant 0 : index
    %115 = vector.load %arg7[%c0_39, %c0_40] : memref<1x32xf32, #tpu.memory_space<vmem>>, vector<1x32xf32>
    %116 = vector.broadcast %115 : vector<1x32xf32> to vector<8x32xf32>
    %117 = arith.addf %114, %116 : vector<8x32xf32>
    %c0_41 = arith.constant 0 : index
    %c0_42 = arith.constant 0 : index
    %c0_43 = arith.constant 0 : index
    %118 = vector.load %arg8[%c0_41, %c0_42, %c0_43] : memref<1x8x32xf32, #tpu.memory_space<vmem>>, vector<1x8x32xf32>
    %119 = vector.shape_cast %118 : vector<1x8x32xf32> to vector<8x32xf32>
    %120 = vector.shape_cast %117 : vector<8x32xf32> to vector<1x8x32xf32>
    tpu.vector_store %arg8[%c0_41, %c0_42, %c0_43], %120 {strides = array<i32>} : memref<1x8x32xf32, #tpu.memory_space<vmem>>, vector<1x8x32xf32>,
    return
  }
  func.func @transform_0(%arg0: i32) -> (i32, i32, i32) {
    %c0_i32 = arith.constant 0 : i32
    %c0_i32_0 = arith.constant 0 : i32
    %c0_i32_1 = arith.constant 0 : i32
    return %arg0, %c0_i32, %c0_i32_0 : i32, i32, i32
  }
  func.func @transform_1(%arg0: i32) -> (i32, i32, i32) {
    %c0_i32 = arith.constant 0 : i32
    %c0_i32_0 = arith.constant 0 : i32
    %c0_i32_1 = arith.constant 0 : i32
    return %arg0, %c0_i32, %c0_i32_0 : i32, i32, i32
  }
  func.func @transform_2(%arg0: i32) -> (i32, i32, i32) {
    %c0_i32 = arith.constant 0 : i32
    %c0_i32_0 = arith.constant 0 : i32
    %c0_i32_1 = arith.constant 0 : i32
    return %arg0, %c0_i32, %c0_i32_0 : i32, i32, i32
  }
  func.func @transform_3(%arg0: i32) -> (i32, i32) {
    %c0_i32 = arith.constant 0 : i32
    %c0_i32_0 = arith.constant 0 : i32
    %c0_i32_1 = arith.constant 0 : i32
    return %c0_i32, %c0_i32_0 : i32, i32
  }
  func.func @transform_4(%arg0: i32) -> (i32, i32) {
    %c0_i32 = arith.constant 0 : i32
    %c0_i32_0 = arith.constant 0 : i32
    %c0_i32_1 = arith.constant 0 : i32
    return %c0_i32, %c0_i32_0 : i32, i32
  }
  func.func @transform_5(%arg0: i32) -> (i32, i32) {
    %c0_i32 = arith.constant 0 : i32
    %c0_i32_0 = arith.constant 0 : i32
    %c0_i32_1 = arith.constant 0 : i32
    return %c0_i32, %c0_i32_0 : i32, i32
  }
  func.func @transform_6(%arg0: i32) -> (i32, i32) {
    %c0_i32 = arith.constant 0 : i32
    %c0_i32_0 = arith.constant 0 : i32
    %c0_i32_1 = arith.constant 0 : i32
    return %c0_i32, %c0_i32_0 : i32, i32
  }
  func.func @transform_7(%arg0: i32) -> (i32, i32, i32) {
    %c0_i32 = arith.constant 0 : i32
    %c0_i32_0 = arith.constant 0 : i32
    %c0_i32_1 = arith.constant 0 : i32
    return %arg0, %c0_i32, %c0_i32_0 : i32, i32, i32
  }
}

module attributes {stable_mosaic.version = 11 : i64} {
  func.func @_linear_kernel(%arg0: i32, %arg1: memref<16x32xf32, #tpu.memory_space<vmem>>, %arg2: memref<32x64xbf16, #tpu.memory_space<vmem>>, %arg3: memref<1x64xf32, #tpu.memory_space<vmem>>, %arg4: memref<16x64xbf16, #tpu.memory_space<vmem>>) attributes {dimension_semantics = [#tpu.dimension_semantics<parallel>], iteration_bounds = array<i64: 1>, scalar_prefetch = 0 : i64, scratch_operands = 0 : i64, tpu.core_type = #tpu.core_type<tc>, window_params = [{transform_indices = @transform_0, window_bounds = array<i64: 16, 32>}, {pipeline_mode = #tpu.pipeline_mode<synchronous>, transform_indices = @transform_1, window_bounds = array<i64: 32, 64>}, {pipeline_mode = #tpu.pipeline_mode<synchronous>, transform_indices = @transform_2, window_bounds = array<i64: 1, 64>}, {transform_indices = @transform_3, window_bounds = array<i64: 16, 64>}]} {
    %c0 = arith.constant 0 : index
    %c0_0 = arith.constant 0 : index
    %0 = vector.load %arg1[%c0, %c0_0] : memref<16x32xf32, #tpu.memory_space<vmem>>, vector<16x32xf32>
    %1 = arith.truncf %0 : vector<16x32xf32> to vector<16x32xbf16>
    %c0_1 = arith.constant 0 : index
    %c0_2 = arith.constant 0 : index
    %2 = vector.load %arg2[%c0_1, %c0_2] : memref<32x64xbf16, #tpu.memory_space<vmem>>, vector<32x64xbf16>
    %cst = arith.constant dense<0.000000e+00> : vector<16x64xf32>
    %3 = tpu.matmul %1, %2, %cst {dimension_numbers = #tpu.dot_dimension_numbers<[1], [0], [0], [1], [0, 0, 1, 1], [], []>} : vector<16x32xbf16>, vector<32x64xbf16>, vector<16x64xf32> -> vector<16x64xf32>
    %c0_3 = arith.constant 0 : index
    %c0_4 = arith.constant 0 : index
    %4 = vector.load %arg3[%c0_3, %c0_4] : memref<1x64xf32, #tpu.memory_space<vmem>>, vector<1x64xf32>
    %5 = vector.broadcast %4 : vector<1x64xf32> to vector<16x64xf32>
    %6 = arith.addf %3, %5 : vector<16x64xf32>
    %7 = arith.truncf %6 : vector<16x64xf32> to vector<16x64xbf16>
    %c0_5 = arith.constant 0 : index
    %c0_6 = arith.constant 0 : index
    %8 = vector.load %arg4[%c0_5, %c0_6] : memref<16x64xbf16, #tpu.memory_space<vmem>>, vector<16x64xbf16>
    tpu.vector_store %arg4[%c0_5, %c0_6], %7 {strides = array<i32>} : memref<16x64xbf16, #tpu.memory_space<vmem>>, vector<16x64xbf16>,
    return
  }
  func.func @transform_0(%arg0: i32) -> (i32, i32) {
    %c0_i32 = arith.constant 0 : i32
    %c0_i32_0 = arith.constant 0 : i32
    return %arg0, %c0_i32 : i32, i32
  }
  func.func @transform_1(%arg0: i32) -> (i32, i32) {
    %c0_i32 = arith.constant 0 : i32
    %c0_i32_0 = arith.constant 0 : i32
    %c0_i32_1 = arith.constant 0 : i32
    return %c0_i32, %c0_i32_0 : i32, i32
  }
  func.func @transform_2(%arg0: i32) -> (i32, i32) {
    %c0_i32 = arith.constant 0 : i32
    %c0_i32_0 = arith.constant 0 : i32
    %c0_i32_1 = arith.constant 0 : i32
    return %c0_i32, %c0_i32_0 : i32, i32
  }
  func.func @transform_3(%arg0: i32) -> (i32, i32) {
    %c0_i32 = arith.constant 0 : i32
    %c0_i32_0 = arith.constant 0 : i32
    return %arg0, %c0_i32 : i32, i32
  }
}

module attributes {stable_mosaic.version = 11 : i64} {
  func.func @_mha_kernel(%arg0: i32, %arg1: memref<1x8x32xbf16, #tpu.memory_space<vmem>>, %arg2: memref<1x8x64xbf16, #tpu.memory_space<vmem>>, %arg3: memref<1x8x32xf32, #tpu.memory_space<vmem>>, %arg4: memref<32x32xbf16, #tpu.memory_space<vmem>>, %arg5: memref<1x32xf32, #tpu.memory_space<vmem>>, %arg6: memref<1x32xf32, #tpu.memory_space<vmem>>, %arg7: memref<1x32xf32, #tpu.memory_space<vmem>>, %arg8: memref<1x8x32xf32, #tpu.memory_space<vmem>>, %arg9: memref<1x8x8xf32, #tpu.memory_space<vmem>>) attributes {dimension_semantics = [#tpu.dimension_semantics<parallel>], iteration_bounds = array<i64: 2>, scalar_prefetch = 0 : i64, scratch_operands = 0 : i64, tpu.core_type = #tpu.core_type<tc>, window_params = [{transform_indices = @transform_0, window_bounds = array<i64: 1, 8, 32>}, {transform_indices = @transform_1, window_bounds = array<i64: 1, 8, 64>}, {transform_indices = @transform_2, window_bounds = array<i64: 1, 8, 32>}, {pipeline_mode = #tpu.pipeline_mode<synchronous>, transform_indices = @transform_3, window_bounds = array<i64: 32, 32>}, {pipeline_mode = #tpu.pipeline_mode<synchronous>, transform_indices = @transform_4, window_bounds = array<i64: 1, 32>}, {pipeline_mode = #tpu.pipeline_mode<synchronous>, transform_indices = @transform_5, window_bounds = array<i64: 1, 32>}, {pipeline_mode = #tpu.pipeline_mode<synchronous>, transform_indices = @transform_6, window_bounds = array<i64: 1, 32>}, {transform_indices = @transform_7, window_bounds = array<i64: 1, 8, 32>}, {transform_indices = @transform_8, window_bounds = array<i64: 1, 8, 8>}]} {
    %c0 = arith.constant 0 : index
    %c0_0 = arith.constant 0 : index
    %c0_1 = arith.constant 0 : index
    %0 = vector.load %arg1[%c0, %c0_0, %c0_1] : memref<1x8x32xbf16, #tpu.memory_space<vmem>>, vector<1x8x32xbf16>
    %1 = vector.shape_cast %0 : vector<1x8x32xbf16> to vector<8x32xbf16>
    %c0_2 = arith.constant 0 : index
    %c0_3 = arith.constant 0 : index
    %c0_4 = arith.constant 0 : index
    %2 = vector.load %arg2[%c0_2, %c0_3, %c0_4] : memref<1x8x64xbf16, #tpu.memory_space<vmem>>, vector<1x8x64xbf16>
    %3 = vector.shape_cast %2 : vector<1x8x64xbf16> to vector<8x64xbf16>
    %4 = vector.extract_strided_slice %3 {offsets = [0, 0], sizes = [8, 32], strides = [1, 1]} : vector<8x64xbf16> to vector<8x32xbf16>
    %5 = vector.extract_strided_slice %3 {offsets = [0, 32], sizes = [8, 32], strides = [1, 1]} : vector<8x64xbf16> to vector<8x32xbf16>
    %c0_5 = arith.constant 0 : index
    %c0_6 = arith.constant 0 : index
    %6 = vector.load %arg4[%c0_5, %c0_6] : memref<32x32xbf16, #tpu.memory_space<vmem>>, vector<32x32xbf16>
    %cst = arith.constant 0.000000e+00 : f32
    %7 = vector.broadcast %cst : f32 to vector<8x32xf32>
    %8 = vector.extract_strided_slice %1 {offsets = [0, 0], sizes = [8, 8], strides = [1, 1]} : vector<8x32xbf16> to vector<8x8xbf16>
    %9 = vector.extract_strided_slice %4 {offsets = [0, 0], sizes = [8, 8], strides = [1, 1]} : vector<8x32xbf16> to vector<8x8xbf16>
    %10 = vector.extract_strided_slice %5 {offsets = [0, 0], sizes = [8, 8], strides = [1, 1]} : vector<8x32xbf16> to vector<8x8xbf16>
    %cst_7 = arith.constant dense<0.000000e+00> : vector<8x8xf32>
    %11 = tpu.matmul %8, %9, %cst_7 {dimension_numbers = #tpu.dot_dimension_numbers<[1], [1], [0], [0], [0, 0, 1, 0], [], []>} : vector<8x8xbf16>, vector<8x8xbf16>, vector<8x8xf32> -> vector<8x8xf32>
    %cst_8 = arith.constant dense<0xFF800000> : vector<8xf32>
    %12 = vector.multi_reduction <maximumf>, %11, %cst_8 [1] : vector<8x8xf32> to vector<8xf32>
    %13 = vector.shape_cast %12 : vector<8xf32> to vector<8x1xf32>
    %14 = vector.broadcast %13 : vector<8x1xf32> to vector<8x8xf32>
    %15 = arith.subf %11, %14 : vector<8x8xf32>
    %16 = math.exp %15 : vector<8x8xf32>
    %cst_9 = arith.constant dense<0.000000e+00> : vector<8xf32>
    %17 = vector.multi_reduction <add>, %16, %cst_9 [1] : vector<8x8xf32> to vector<8xf32>
    %18 = vector.shape_cast %17 : vector<8xf32> to vector<8x1xf32>
    %19 = tpu.reciprocal %18 {approx = true} : vector<8x1xf32> -> vector<8x1xf32>
    %20 = vector.broadcast %19 : vector<8x1xf32> to vector<8x8xf32>
    %21 = arith.mulf %16, %20 : vector<8x8xf32>
    %22 = arith.truncf %21 : vector<8x8xf32> to vector<8x8xbf16>
    %cst_10 = arith.constant dense<0.000000e+00> : vector<8x8xf32>
    %23 = tpu.matmul %22, %10, %cst_10 {dimension_numbers = #tpu.dot_dimension_numbers<[1], [0], [0], [1], [0, 0, 1, 1], [], []>} : vector<8x8xbf16>, vector<8x8xbf16>, vector<8x8xf32> -> vector<8x8xf32>
    %24 = arith.truncf %23 : vector<8x8xf32> to vector<8x8xbf16>
    %25 = vector.extract_strided_slice %6 {offsets = [0, 0], sizes = [8, 32], strides = [1, 1]} : vector<32x32xbf16> to vector<8x32xbf16>
    %cst_11 = arith.constant dense<0.000000e+00> : vector<8x32xf32>
    %26 = tpu.matmul %24, %25, %cst_11 {dimension_numbers = #tpu.dot_dimension_numbers<[1], [0], [0], [1], [0, 0, 1, 1], [], []>} : vector<8x8xbf16>, vector<8x32xbf16>, vector<8x32xf32> -> vector<8x32xf32>
    %27 = arith.addf %7, %26 : vector<8x32xf32>
    %28 = vector.extract_strided_slice %1 {offsets = [0, 8], sizes = [8, 8], strides = [1, 1]} : vector<8x32xbf16> to vector<8x8xbf16>
    %29 = vector.extract_strided_slice %4 {offsets = [0, 8], sizes = [8, 8], strides = [1, 1]} : vector<8x32xbf16> to vector<8x8xbf16>
    %30 = vector.extract_strided_slice %5 {offsets = [0, 8], sizes = [8, 8], strides = [1, 1]} : vector<8x32xbf16> to vector<8x8xbf16>
    %cst_12 = arith.constant dense<0.000000e+00> : vector<8x8xf32>
    %31 = tpu.matmul %28, %29, %cst_12 {dimension_numbers = #tpu.dot_dimension_numbers<[1], [1], [0], [0], [0, 0, 1, 0], [], []>} : vector<8x8xbf16>, vector<8x8xbf16>, vector<8x8xf32> -> vector<8x8xf32>
    %cst_13 = arith.constant dense<0xFF800000> : vector<8xf32>
    %32 = vector.multi_reduction <maximumf>, %31, %cst_13 [1] : vector<8x8xf32> to vector<8xf32>
    %33 = vector.shape_cast %32 : vector<8xf32> to vector<8x1xf32>
    %34 = vector.broadcast %33 : vector<8x1xf32> to vector<8x8xf32>
    %35 = arith.subf %31, %34 : vector<8x8xf32>
    %36 = math.exp %35 : vector<8x8xf32>
    %cst_14 = arith.constant dense<0.000000e+00> : vector<8xf32>
    %37 = vector.multi_reduction <add>, %36, %cst_14 [1] : vector<8x8xf32> to vector<8xf32>
    %38 = vector.shape_cast %37 : vector<8xf32> to vector<8x1xf32>
    %39 = tpu.reciprocal %38 {approx = true} : vector<8x1xf32> -> vector<8x1xf32>
    %40 = vector.broadcast %39 : vector<8x1xf32> to vector<8x8xf32>
    %41 = arith.mulf %36, %40 : vector<8x8xf32>
    %42 = arith.truncf %41 : vector<8x8xf32> to vector<8x8xbf16>
    %cst_15 = arith.constant dense<0.000000e+00> : vector<8x8xf32>
    %43 = tpu.matmul %42, %30, %cst_15 {dimension_numbers = #tpu.dot_dimension_numbers<[1], [0], [0], [1], [0, 0, 1, 1], [], []>} : vector<8x8xbf16>, vector<8x8xbf16>, vector<8x8xf32> -> vector<8x8xf32>
    %44 = arith.truncf %43 : vector<8x8xf32> to vector<8x8xbf16>
    %45 = vector.extract_strided_slice %6 {offsets = [8, 0], sizes = [8, 32], strides = [1, 1]} : vector<32x32xbf16> to vector<8x32xbf16>
    %cst_16 = arith.constant dense<0.000000e+00> : vector<8x32xf32>
    %46 = tpu.matmul %44, %45, %cst_16 {dimension_numbers = #tpu.dot_dimension_numbers<[1], [0], [0], [1], [0, 0, 1, 1], [], []>} : vector<8x8xbf16>, vector<8x32xbf16>, vector<8x32xf32> -> vector<8x32xf32>
    %47 = arith.addf %27, %46 : vector<8x32xf32>
    %48 = arith.addf %21, %41 : vector<8x8xf32>
    %49 = vector.extract_strided_slice %1 {offsets = [0, 16], sizes = [8, 8], strides = [1, 1]} : vector<8x32xbf16> to vector<8x8xbf16>
    %50 = vector.extract_strided_slice %4 {offsets = [0, 16], sizes = [8, 8], strides = [1, 1]} : vector<8x32xbf16> to vector<8x8xbf16>
    %51 = vector.extract_strided_slice %5 {offsets = [0, 16], sizes = [8, 8], strides = [1, 1]} : vector<8x32xbf16> to vector<8x8xbf16>
    %cst_17 = arith.constant dense<0.000000e+00> : vector<8x8xf32>
    %52 = tpu.matmul %49, %50, %cst_17 {dimension_numbers = #tpu.dot_dimension_numbers<[1], [1], [0], [0], [0, 0, 1, 0], [], []>} : vector<8x8xbf16>, vector<8x8xbf16>, vector<8x8xf32> -> vector<8x8xf32>
    %cst_18 = arith.constant dense<0xFF800000> : vector<8xf32>
    %53 = vector.multi_reduction <maximumf>, %52, %cst_18 [1] : vector<8x8xf32> to vector<8xf32>
    %54 = vector.shape_cast %53 : vector<8xf32> to vector<8x1xf32>
    %55 = vector.broadcast %54 : vector<8x1xf32> to vector<8x8xf32>
    %56 = arith.subf %52, %55 : vector<8x8xf32>
    %57 = math.exp %56 : vector<8x8xf32>
    %cst_19 = arith.constant dense<0.000000e+00> : vector<8xf32>
    %58 = vector.multi_reduction <add>, %57, %cst_19 [1] : vector<8x8xf32> to vector<8xf32>
    %59 = vector.shape_cast %58 : vector<8xf32> to vector<8x1xf32>
    %60 = tpu.reciprocal %59 {approx = true} : vector<8x1xf32> -> vector<8x1xf32>
    %61 = vector.broadcast %60 : vector<8x1xf32> to vector<8x8xf32>
    %62 = arith.mulf %57, %61 : vector<8x8xf32>
    %63 = arith.truncf %62 : vector<8x8xf32> to vector<8x8xbf16>
    %cst_20 = arith.constant dense<0.000000e+00> : vector<8x8xf32>
    %64 = tpu.matmul %63, %51, %cst_20 {dimension_numbers = #tpu.dot_dimension_numbers<[1], [0], [0], [1], [0, 0, 1, 1], [], []>} : vector<8x8xbf16>, vector<8x8xbf16>, vector<8x8xf32> -> vector<8x8xf32>
    %65 = arith.truncf %64 : vector<8x8xf32> to vector<8x8xbf16>
    %66 = vector.extract_strided_slice %6 {offsets = [16, 0], sizes = [8, 32], strides = [1, 1]} : vector<32x32xbf16> to vector<8x32xbf16>
    %cst_21 = arith.constant dense<0.000000e+00> : vector<8x32xf32>
    %67 = tpu.matmul %65, %66, %cst_21 {dimension_numbers = #tpu.dot_dimension_numbers<[1], [0], [0], [1], [0, 0, 1, 1], [], []>} : vector<8x8xbf16>, vector<8x32xbf16>, vector<8x32xf32> -> vector<8x32xf32>
    %68 = arith.addf %47, %67 : vector<8x32xf32>
    %69 = arith.addf %48, %62 : vector<8x8xf32>
    %70 = vector.extract_strided_slice %1 {offsets = [0, 24], sizes = [8, 8], strides = [1, 1]} : vector<8x32xbf16> to vector<8x8xbf16>
    %71 = vector.extract_strided_slice %4 {offsets = [0, 24], sizes = [8, 8], strides = [1, 1]} : vector<8x32xbf16> to vector<8x8xbf16>
    %72 = vector.extract_strided_slice %5 {offsets = [0, 24], sizes = [8, 8], strides = [1, 1]} : vector<8x32xbf16> to vector<8x8xbf16>
    %cst_22 = arith.constant dense<0.000000e+00> : vector<8x8xf32>
    %73 = tpu.matmul %70, %71, %cst_22 {dimension_numbers = #tpu.dot_dimension_numbers<[1], [1], [0], [0], [0, 0, 1, 0], [], []>} : vector<8x8xbf16>, vector<8x8xbf16>, vector<8x8xf32> -> vector<8x8xf32>
    %cst_23 = arith.constant dense<0xFF800000> : vector<8xf32>
    %74 = vector.multi_reduction <maximumf>, %73, %cst_23 [1] : vector<8x8xf32> to vector<8xf32>
    %75 = vector.shape_cast %74 : vector<8xf32> to vector<8x1xf32>
    %76 = vector.broadcast %75 : vector<8x1xf32> to vector<8x8xf32>
    %77 = arith.subf %73, %76 : vector<8x8xf32>
    %78 = math.exp %77 : vector<8x8xf32>
    %cst_24 = arith.constant dense<0.000000e+00> : vector<8xf32>
    %79 = vector.multi_reduction <add>, %78, %cst_24 [1] : vector<8x8xf32> to vector<8xf32>
    %80 = vector.shape_cast %79 : vector<8xf32> to vector<8x1xf32>
    %81 = tpu.reciprocal %80 {approx = true} : vector<8x1xf32> -> vector<8x1xf32>
    %82 = vector.broadcast %81 : vector<8x1xf32> to vector<8x8xf32>
    %83 = arith.mulf %78, %82 : vector<8x8xf32>
    %84 = arith.truncf %83 : vector<8x8xf32> to vector<8x8xbf16>
    %cst_25 = arith.constant dense<0.000000e+00> : vector<8x8xf32>
    %85 = tpu.matmul %84, %72, %cst_25 {dimension_numbers = #tpu.dot_dimension_numbers<[1], [0], [0], [1], [0, 0, 1, 1], [], []>} : vector<8x8xbf16>, vector<8x8xbf16>, vector<8x8xf32> -> vector<8x8xf32>
    %86 = arith.truncf %85 : vector<8x8xf32> to vector<8x8xbf16>
    %87 = vector.extract_strided_slice %6 {offsets = [24, 0], sizes = [8, 32], strides = [1, 1]} : vector<32x32xbf16> to vector<8x32xbf16>
    %cst_26 = arith.constant dense<0.000000e+00> : vector<8x32xf32>
    %88 = tpu.matmul %86, %87, %cst_26 {dimension_numbers = #tpu.dot_dimension_numbers<[1], [0], [0], [1], [0, 0, 1, 1], [], []>} : vector<8x8xbf16>, vector<8x32xbf16>, vector<8x32xf32> -> vector<8x32xf32>
    %89 = arith.addf %68, %88 : vector<8x32xf32>
    %90 = arith.addf %69, %83 : vector<8x8xf32>
    %c0_27 = arith.constant 0 : index
    %c0_28 = arith.constant 0 : index
    %91 = vector.load %arg5[%c0_27, %c0_28] : memref<1x32xf32, #tpu.memory_space<vmem>>, vector<1x32xf32>
    %92 = vector.broadcast %91 : vector<1x32xf32> to vector<8x32xf32>
    %93 = arith.addf %89, %92 : vector<8x32xf32>
    %c0_29 = arith.constant 0 : index
    %c0_30 = arith.constant 0 : index
    %c0_31 = arith.constant 0 : index
    %94 = vector.load %arg3[%c0_29, %c0_30, %c0_31] : memref<1x8x32xf32, #tpu.memory_space<vmem>>, vector<1x8x32xf32>
    %95 = vector.shape_cast %94 : vector<1x8x32xf32> to vector<8x32xf32>
    %96 = arith.addf %93, %95 : vector<8x32xf32>
    %cst_32 = arith.constant dense<0.000000e+00> : vector<8xf32>
    %97 = vector.multi_reduction <add>, %96, %cst_32 [1] : vector<8x32xf32> to vector<8xf32>
    %98 = vector.shape_cast %97 : vector<8xf32> to vector<8x1xf32>
    %cst_33 = arith.constant 3.200000e+01 : f32
    %99 = vector.broadcast %cst_33 : f32 to vector<8x1xf32>
    %100 = arith.divf %98, %99 : vector<8x1xf32>
    %101 = vector.broadcast %100 : vector<8x1xf32> to vector<8x32xf32>
    %102 = arith.subf %96, %101 : vector<8x32xf32>
    %103 = arith.mulf %102, %102 : vector<8x32xf32>
    %cst_34 = arith.constant dense<0.000000e+00> : vector<8xf32>
    %104 = vector.multi_reduction <add>, %103, %cst_34 [1] : vector<8x32xf32> to vector<8xf32>
    %105 = vector.shape_cast %104 : vector<8xf32> to vector<8x1xf32>
    %cst_35 = arith.constant 3.200000e+01 : f32
    %106 = vector.broadcast %cst_35 : f32 to vector<8x1xf32>
    %107 = arith.divf %105, %106 : vector<8x1xf32>
    %108 = vector.broadcast %100 : vector<8x1xf32> to vector<8x32xf32>
    %109 = arith.subf %96, %108 : vector<8x32xf32>
    %cst_36 = arith.constant 9.99999974E-6 : f32
    %110 = vector.broadcast %cst_36 : f32 to vector<8x1xf32>
    %111 = arith.addf %107, %110 : vector<8x1xf32>
    %112 = math.rsqrt %111 : vector<8x1xf32>
    %113 = vector.broadcast %112 : vector<8x1xf32> to vector<8x32xf32>
    %114 = arith.mulf %109, %113 : vector<8x32xf32>
    %c0_37 = arith.constant 0 : index
    %c0_38 = arith.constant 0 : index
    %115 = vector.load %arg6[%c0_37, %c0_38] : memref<1x32xf32, #tpu.memory_space<vmem>>, vector<1x32xf32>
    %116 = vector.broadcast %115 : vector<1x32xf32> to vector<8x32xf32>
    %117 = arith.mulf %114, %116 : vector<8x32xf32>
    %c0_39 = arith.constant 0 : index
    %c0_40 = arith.constant 0 : index
    %118 = vector.load %arg7[%c0_39, %c0_40] : memref<1x32xf32, #tpu.memory_space<vmem>>, vector<1x32xf32>
    %119 = vector.broadcast %118 : vector<1x32xf32> to vector<8x32xf32>
    %120 = arith.addf %117, %119 : vector<8x32xf32>
    %c0_41 = arith.constant 0 : index
    %c0_42 = arith.constant 0 : index
    %c0_43 = arith.constant 0 : index
    %121 = vector.load %arg8[%c0_41, %c0_42, %c0_43] : memref<1x8x32xf32, #tpu.memory_space<vmem>>, vector<1x8x32xf32>
    %122 = vector.shape_cast %121 : vector<1x8x32xf32> to vector<8x32xf32>
    %123 = vector.shape_cast %120 : vector<8x32xf32> to vector<1x8x32xf32>
    tpu.vector_store %arg8[%c0_41, %c0_42, %c0_43], %123 {strides = array<i32>} : memref<1x8x32xf32, #tpu.memory_space<vmem>>, vector<1x8x32xf32>,
    %cst_44 = arith.constant 2.500000e-01 : f32
    %124 = vector.broadcast %cst_44 : f32 to vector<8x8xf32>
    %125 = arith.mulf %90, %124 : vector<8x8xf32>
    %c0_45 = arith.constant 0 : index
    %c0_46 = arith.constant 0 : index
    %c0_47 = arith.constant 0 : index
    %126 = vector.load %arg9[%c0_45, %c0_46, %c0_47] : memref<1x8x8xf32, #tpu.memory_space<vmem>>, vector<1x8x8xf32>
    %127 = vector.shape_cast %126 : vector<1x8x8xf32> to vector<8x8xf32>
    %128 = vector.shape_cast %125 : vector<8x8xf32> to vector<1x8x8xf32>
    tpu.vector_store %arg9[%c0_45, %c0_46, %c0_47], %128 {strides = array<i32>} : memref<1x8x8xf32, #tpu.memory_space<vmem>>, vector<1x8x8xf32>,
    return
  }
  func.func @transform_0(%arg0: i32) -> (i32, i32, i32) {
    %c0_i32 = arith.constant 0 : i32
    %c0_i32_0 = arith.constant 0 : i32
    %c0_i32_1 = arith.constant 0 : i32
    return %arg0, %c0_i32, %c0_i32_0 : i32, i32, i32
  }
  func.func @transform_1(%arg0: i32) -> (i32, i32, i32) {
    %c0_i32 = arith.constant 0 : i32
    %c0_i32_0 = arith.constant 0 : i32
    %c0_i32_1 = arith.constant 0 : i32
    return %arg0, %c0_i32, %c0_i32_0 : i32, i32, i32
  }
  func.func @transform_2(%arg0: i32) -> (i32, i32, i32) {
    %c0_i32 = arith.constant 0 : i32
    %c0_i32_0 = arith.constant 0 : i32
    %c0_i32_1 = arith.constant 0 : i32
    return %arg0, %c0_i32, %c0_i32_0 : i32, i32, i32
  }
  func.func @transform_3(%arg0: i32) -> (i32, i32) {
    %c0_i32 = arith.constant 0 : i32
    %c0_i32_0 = arith.constant 0 : i32
    %c0_i32_1 = arith.constant 0 : i32
    return %c0_i32, %c0_i32_0 : i32, i32
  }
  func.func @transform_4(%arg0: i32) -> (i32, i32) {
    %c0_i32 = arith.constant 0 : i32
    %c0_i32_0 = arith.constant 0 : i32
    %c0_i32_1 = arith.constant 0 : i32
    return %c0_i32, %c0_i32_0 : i32, i32
  }
  func.func @transform_5(%arg0: i32) -> (i32, i32) {
    %c0_i32 = arith.constant 0 : i32
    %c0_i32_0 = arith.constant 0 : i32
    %c0_i32_1 = arith.constant 0 : i32
    return %c0_i32, %c0_i32_0 : i32, i32
  }
  func.func @transform_6(%arg0: i32) -> (i32, i32) {
    %c0_i32 = arith.constant 0 : i32
    %c0_i32_0 = arith.constant 0 : i32
    %c0_i32_1 = arith.constant 0 : i32
    return %c0_i32, %c0_i32_0 : i32, i32
  }
  func.func @transform_7(%arg0: i32) -> (i32, i32, i32) {
    %c0_i32 = arith.constant 0 : i32
    %c0_i32_0 = arith.constant 0 : i32
    %c0_i32_1 = arith.constant 0 : i32
    return %arg0, %c0_i32, %c0_i32_0 : i32, i32, i32
  }
  func.func @transform_8(%arg0: i32) -> (i32, i32, i32) {
    %c0_i32 = arith.constant 0 : i32
    %c0_i32_0 = arith.constant 0 : i32
    %c0_i32_1 = arith.constant 0 : i32
    return %arg0, %c0_i32, %c0_i32_0 : i32, i32, i32
  }
}

module attributes {stable_mosaic.version = 11 : i64} {
  func.func @_ffn_kernel(%arg0: i32, %arg1: memref<16x32xf32, #tpu.memory_space<vmem>>, %arg2: memref<16x32xf32, #tpu.memory_space<vmem>>, %arg3: memref<16x32xf32, #tpu.memory_space<vmem>>, %arg4: memref<32x64xbf16, #tpu.memory_space<vmem>>, %arg5: memref<1x64xf32, #tpu.memory_space<vmem>>, %arg6: memref<64x32xbf16, #tpu.memory_space<vmem>>, %arg7: memref<1x32xf32, #tpu.memory_space<vmem>>, %arg8: memref<1x32xf32, #tpu.memory_space<vmem>>, %arg9: memref<1x32xf32, #tpu.memory_space<vmem>>, %arg10: memref<16x32xf32, #tpu.memory_space<vmem>>) attributes {dimension_semantics = [#tpu.dimension_semantics<parallel>], iteration_bounds = array<i64: 1>, scalar_prefetch = 0 : i64, scratch_operands = 0 : i64, tpu.core_type = #tpu.core_type<tc>, window_params = [{transform_indices = @transform_0, window_bounds = array<i64: 16, 32>}, {transform_indices = @transform_1, window_bounds = array<i64: 16, 32>}, {transform_indices = @transform_2, window_bounds = array<i64: 16, 32>}, {pipeline_mode = #tpu.pipeline_mode<synchronous>, transform_indices = @transform_3, window_bounds = array<i64: 32, 64>}, {pipeline_mode = #tpu.pipeline_mode<synchronous>, transform_indices = @transform_4, window_bounds = array<i64: 1, 64>}, {pipeline_mode = #tpu.pipeline_mode<synchronous>, transform_indices = @transform_5, window_bounds = array<i64: 64, 32>}, {pipeline_mode = #tpu.pipeline_mode<synchronous>, transform_indices = @transform_6, window_bounds = array<i64: 1, 32>}, {pipeline_mode = #tpu.pipeline_mode<synchronous>, transform_indices = @transform_7, window_bounds = array<i64: 1, 32>}, {pipeline_mode = #tpu.pipeline_mode<synchronous>, transform_indices = @transform_8, window_bounds = array<i64: 1, 32>}, {transform_indices = @transform_9, window_bounds = array<i64: 16, 32>}]} {
    %c0 = arith.constant 0 : index
    %c0_0 = arith.constant 0 : index
    %0 = vector.load %arg1[%c0, %c0_0] : memref<16x32xf32, #tpu.memory_space<vmem>>, vector<16x32xf32>
    %c0_1 = arith.constant 0 : index
    %c0_2 = arith.constant 0 : index
    %1 = vector.load %arg2[%c0_1, %c0_2] : memref<16x32xf32, #tpu.memory_space<vmem>>, vector<16x32xf32>
    %2 = arith.addf %0, %1 : vector<16x32xf32>
    %c0_3 = arith.constant 0 : index
    %c0_4 = arith.constant 0 : index
    %3 = vector.load %arg3[%c0_3, %c0_4] : memref<16x32xf32, #tpu.memory_space<vmem>>, vector<16x32xf32>
    %4 = arith.addf %2, %3 : vector<16x32xf32>
    %5 = arith.truncf %4 : vector<16x32xf32> to vector<16x32xbf16>
    %c0_5 = arith.constant 0 : index
    %c0_6 = arith.constant 0 : index
    %6 = vector.load %arg4[%c0_5, %c0_6] : memref<32x64xbf16, #tpu.memory_space<vmem>>, vector<32x64xbf16>
    %cst = arith.constant dense<0.000000e+00> : vector<16x64xf32>
    %7 = tpu.matmul %5, %6, %cst {dimension_numbers = #tpu.dot_dimension_numbers<[1], [0], [0], [1], [0, 0, 1, 1], [], []>} : vector<16x32xbf16>, vector<32x64xbf16>, vector<16x64xf32> -> vector<16x64xf32>
    %c0_7 = arith.constant 0 : index
    %c0_8 = arith.constant 0 : index
    %8 = vector.load %arg5[%c0_7, %c0_8] : memref<1x64xf32, #tpu.memory_space<vmem>>, vector<1x64xf32>
    %9 = vector.broadcast %8 : vector<1x64xf32> to vector<16x64xf32>
    %10 = arith.addf %7, %9 : vector<16x64xf32>
    %cst_9 = arith.constant 0.000000e+00 : f32
    %11 = vector.broadcast %cst_9 : f32 to vector<16x64xf32>
    %12 = arith.maximumf %10, %11 : vector<16x64xf32>
    %13 = arith.truncf %12 : vector<16x64xf32> to vector<16x64xbf16>
    %c0_10 = arith.constant 0 : index
    %c0_11 = arith.constant 0 : index
    %14 = vector.load %arg6[%c0_10, %c0_11] : memref<64x32xbf16, #tpu.memory_space<vmem>>, vector<64x32xbf16>
    %cst_12 = arith.constant dense<0.000000e+00> : vector<16x32xf32>
    %15 = tpu.matmul %13, %14, %cst_12 {dimension_numbers = #tpu.dot_dimension_numbers<[1], [0], [0], [1], [0, 0, 1, 1], [], []>} : vector<16x64xbf16>, vector<64x32xbf16>, vector<16x32xf32> -> vector<16x32xf32>
    %c0_13 = arith.constant 0 : index
    %c0_14 = arith.constant 0 : index
    %16 = vector.load %arg7[%c0_13, %c0_14] : memref<1x32xf32, #tpu.memory_space<vmem>>, vector<1x32xf32>
    %17 = vector.broadcast %16 : vector<1x32xf32> to vector<16x32xf32>
    %18 = arith.addf %15, %17 : vector<16x32xf32>
    %19 = arith.addf %18, %4 : vector<16x32xf32>
    %cst_15 = arith.constant dense<0.000000e+00> : vector<16xf32>
    %20 = vector.multi_reduction <add>, %19, %cst_15 [1] : vector<16x32xf32> to vector<16xf32>
    %21 = vector.shape_cast %20 : vector<16xf32> to vector<16x1xf32>
    %cst_16 = arith.constant 3.200000e+01 : f32
    %22 = vector.broadcast %cst_16 : f32 to vector<16x1xf32>
    %23 = arith.divf %21, %22 : vector<16x1xf32>
    %24 = vector.broadcast %23 : vector<16x1xf32> to vector<16x32xf32>
    %25 = arith.subf %19, %24 : vector<16x32xf32>
    %26 = arith.mulf %25, %25 : vector<16x32xf32>
    %cst_17 = arith.constant dense<0.000000e+00> : vector<16xf32>
    %27 = vector.multi_reduction <add>, %26, %cst_17 [1] : vector<16x32xf32> to vector<16xf32>
    %28 = vector.shape_cast %27 : vector<16xf32> to vector<16x1xf32>
    %cst_18 = arith.constant 3.200000e+01 : f32
    %29 = vector.broadcast %cst_18 : f32 to vector<16x1xf32>
    %30 = arith.divf %28, %29 : vector<16x1xf32>
    %31 = vector.broadcast %23 : vector<16x1xf32> to vector<16x32xf32>
    %32 = arith.subf %19, %31 : vector<16x32xf32>
    %cst_19 = arith.constant 9.99999974E-6 : f32
    %33 = vector.broadcast %cst_19 : f32 to vector<16x1xf32>
    %34 = arith.addf %30, %33 : vector<16x1xf32>
    %35 = math.rsqrt %34 : vector<16x1xf32>
    %36 = vector.broadcast %35 : vector<16x1xf32> to vector<16x32xf32>
    %37 = arith.mulf %32, %36 : vector<16x32xf32>
    %c0_20 = arith.constant 0 : index
    %c0_21 = arith.constant 0 : index
    %38 = vector.load %arg8[%c0_20, %c0_21] : memref<1x32xf32, #tpu.memory_space<vmem>>, vector<1x32xf32>
    %39 = vector.broadcast %38 : vector<1x32xf32> to vector<16x32xf32>
    %40 = arith.mulf %37, %39 : vector<16x32xf32>
    %c0_22 = arith.constant 0 : index
    %c0_23 = arith.constant 0 : index
    %41 = vector.load %arg9[%c0_22, %c0_23] : memref<1x32xf32, #tpu.memory_space<vmem>>, vector<1x32xf32>
    %42 = vector.broadcast %41 : vector<1x32xf32> to vector<16x32xf32>
    %43 = arith.addf %40, %42 : vector<16x32xf32>
    %c0_24 = arith.constant 0 : index
    %c0_25 = arith.constant 0 : index
    %44 = vector.load %arg10[%c0_24, %c0_25] : memref<16x32xf32, #tpu.memory_space<vmem>>, vector<16x32xf32>
    tpu.vector_store %arg10[%c0_24, %c0_25], %43 {strides = array<i32>} : memref<16x32xf32, #tpu.memory_space<vmem>>, vector<16x32xf32>,
    return
  }
  func.func @transform_0(%arg0: i32) -> (i32, i32) {
    %c0_i32 = arith.constant 0 : i32
    %c0_i32_0 = arith.constant 0 : i32
    return %arg0, %c0_i32 : i32, i32
  }
  func.func @transform_1(%arg0: i32) -> (i32, i32) {
    %c0_i32 = arith.constant 0 : i32
    %c0_i32_0 = arith.constant 0 : i32
    return %arg0, %c0_i32 : i32, i32
  }
  func.func @transform_2(%arg0: i32) -> (i32, i32) {
    %c0_i32 = arith.constant 0 : i32
    %c0_i32_0 = arith.constant 0 : i32
    return %arg0, %c0_i32 : i32, i32
  }
  func.func @transform_3(%arg0: i32) -> (i32, i32) {
    %c0_i32 = arith.constant 0 : i32
    %c0_i32_0 = arith.constant 0 : i32
    %c0_i32_1 = arith.constant 0 : i32
    return %c0_i32, %c0_i32_0 : i32, i32
  }
  func.func @transform_4(%arg0: i32) -> (i32, i32) {
    %c0_i32 = arith.constant 0 : i32
    %c0_i32_0 = arith.constant 0 : i32
    %c0_i32_1 = arith.constant 0 : i32
    return %c0_i32, %c0_i32_0 : i32, i32
  }
  func.func @transform_5(%arg0: i32) -> (i32, i32) {
    %c0_i32 = arith.constant 0 : i32
    %c0_i32_0 = arith.constant 0 : i32
    %c0_i32_1 = arith.constant 0 : i32
    return %c0_i32, %c0_i32_0 : i32, i32
  }
  func.func @transform_6(%arg0: i32) -> (i32, i32) {
    %c0_i32 = arith.constant 0 : i32
    %c0_i32_0 = arith.constant 0 : i32
    %c0_i32_1 = arith.constant 0 : i32
    return %c0_i32, %c0_i32_0 : i32, i32
  }
  func.func @transform_7(%arg0: i32) -> (i32, i32) {
    %c0_i32 = arith.constant 0 : i32
    %c0_i32_0 = arith.constant 0 : i32
    %c0_i32_1 = arith.constant 0 : i32
    return %c0_i32, %c0_i32_0 : i32, i32
  }
  func.func @transform_8(%arg0: i32) -> (i32, i32) {
    %c0_i32 = arith.constant 0 : i32
    %c0_i32_0 = arith.constant 0 : i32
    %c0_i32_1 = arith.constant 0 : i32
    return %c0_i32, %c0_i32_0 : i32, i32
  }
  func.func @transform_9(%arg0: i32) -> (i32, i32) {
    %c0_i32 = arith.constant 0 : i32
    %c0_i32_0 = arith.constant 0 : i32
    return %arg0, %c0_i32 : i32, i32
  }
}

</mosaic_0001>

<bundles_post_ra>
// kernel: decoder_layer_phase2_forward.7
= control target key start
LH: loop header
LB: loop body
LE: loop exit
PB: predicated region body
PF: predicated region fallthrough
CT: control target
= control target key end

     0   :  { %v444_v0 = vmov 0.0   ;;  %vm445_vm0 = vmmov 0   ;;  %vm63_vm1 = vcmask 261120   ;;  %vm116_vm2 = vcmask 257024   ;;  %s593_s1 = inlined_call_operand.vmem [shape: bf16[32,32], index: 1, kind: input, shape index: {}]   ;;  %s594_s3 = inlined_call_operand.vmem [shape: bf16[32,64], index: 3, kind: input, shape index: {}]   ;;  %s595_s0 = inlined_call_operand.vmem [shape: f32[16,32], index: 0, kind: input, shape index: {}]   ;;  %s596_s5 = inlined_call_operand.vmem [shape: bf16[32,32], index: 5, kind: input, shape index: {}]   ;;  %s597_s7 = inlined_call_operand.vmem [shape: bf16[32,32], index: 7, kind: input, shape index: {}]   ;;  %s598_s2 = inlined_call_operand.vmem [shape: f32[1,32], index: 2, kind: input, shape index: {}]   ;;  %s599_s4 = inlined_call_operand.vmem [shape: f32[1,64], index: 4, kind: input, shape index: {}]   ;;  %s600_s9 = inlined_call_operand.vmem [shape: bf16[16,32], index: 9, kind: output, shape index: {0}]   ;;  %s601_s10 = inlined_call_operand.vmem [shape: bf16[16,64], index: 10, kind: output, shape index: {1}]   ;;  %s602_s6 = inlined_call_operand.vmem [shape: f32[1,32], index: 6, kind: input, shape index: {}]   ;;  %s603_s8 = inlined_call_operand.vmem [shape: f32[1,32], index: 8, kind: input, shape index: {}]   ;;  %s604_s11 = inlined_call_operand.vmem [shape: bf16[16,32], index: 11, kind: output, shape index: {2}]   ;;  %s605_s12 = inlined_call_operand.vmem [shape: bf16[16,32], index: 12, kind: output, shape index: {3}]  }
   0x1   :  { %402 = vmatprep.subr.bf16.mxu0 %v444_v0  ;;  %410 = vmatprep.subr.bf16.mxu1 %v444_v0  ;;  %v436_v1 = vld [vmem:[%s593_s1] sm:$0xff]   ;;  %v438_v3 = vld [vmem:[%s593_s1 + $0x8] sm:$0xff]   ;;  %vm191_vm3 = vcmask 519168  }
   0x2   :  { %v437_v2 = vld [vmem:[%s594_s3] sm:$0xff]   ;;  %406 = vmatprep.mubr.msk.bf16.mxu0 %vm445_vm0, %v444_v0  ;;  %414 = vmatprep.mubr.msk.bf16.mxu1 %vm445_vm0, %v444_v0  ;;  %v439_v4 = vld [vmem:[%s594_s3 + $0x8] sm:$0xff]  }
   0x3   :  { %403 = vmatpush3.bf16.msra.mxu0 %v436_v1  ;;  %411 = vmatpush3.bf16.msra.mxu1 %v437_v2  ;;  %v37_v5 = vld [vmem:[%s595_s0] sm:$0xff]  ;;  %v38_v6 = vld [vmem:[%s595_s0 + $0x8] sm:$0xff] }
   0x4   :  { %404 = vmatprep.subr.bf16.mxu0 %v444_v0  ;;  %412 = vmatprep.subr.bf16.mxu1 %v444_v0  ;;  %v39_v7 = vpack.c.bf16 %v38_v6, %v37_v5  ;;  %v440_v8 = vld [vmem:[%s596_s5] sm:$0xff]   ;;  %v442_v10 = vld [vmem:[%s596_s5 + $0x8] sm:$0xff]  }
   0x5   :  { %v441_v9 = vld [vmem:[%s597_s7] sm:$0xff]   ;;  %v443_v11 = vld [vmem:[%s597_s7 + $0x8] sm:$0xff]  }
   0x6   :  { %v358_v12 = vld [vmem:[%s598_s2] ss:$0 sm:$0xff] }
   0x7   :  { %405 = vmatpush3.bf16.msra.mxu0 %v438_v3  ;;  %413 = vmatpush3.bf16.msra.mxu1 %v439_v4  ;;  %v364_v13 = vld [vmem:[%s599_s4] ss:$0 sm:$0xff] }
   0x8   :  { %418 = vmatprep.subr.bf16.mxu0 %v444_v0  ;;  %426 = vmatprep.subr.bf16.mxu1 %v444_v0  ;;  %v370_v30 = vld [vmem:[%s602_s6] ss:$0 sm:$0xff] }
   0x9   :  { %v376_v31 = vld [vmem:[%s603_s8] ss:$0 sm:$0xff] }
   0xa   :  { %407 = vmatmul.mubr.msk.bf16.vlgmr.msra.gmra.mrb[0].mxu0 %vm63_vm1, %v39_v7  ;;  %415 = vmatmul.mubr.msk.bf16.vlgmr.msra.gmra.mrb[0].mxu1 %vm63_vm1, %v39_v7 }
   0xb   :  { %419 = vmatpush3.bf16.msra.mxu0 %v440_v8  ;;  %427 = vmatpush3.bf16.msra.mxu1 %v441_v9 }
   0xc   :  { %420 = vmatprep.subr.bf16.mxu0 %v444_v0  ;;  %428 = vmatprep.subr.bf16.mxu1 %v444_v0 }
   0xd   :  { %422 = vmatprep.mubr.msk.bf16.mxu0 %vm445_vm0, %v444_v0  ;;  %430 = vmatprep.mubr.msk.bf16.mxu1 %vm445_vm0, %v444_v0 }
   0xf   :  { %421 = vmatpush3.bf16.msra.mxu0 %v442_v10  ;;  %429 = vmatpush3.bf16.msra.mxu1 %v443_v11 }
  0x12   :  { %423 = vmatmul.mubr.msk.bf16.vlgmr.msra.gmra.mrb[4].mxu0 %vm63_vm1, %v39_v7  ;;  %431 = vmatmul.mubr.msk.bf16.vlgmr.msra.gmra.mrb[4].mxu1 %vm63_vm1, %v39_v7 }
  0xdd   :  { %v101_v14 = vpop.f32.mrb[0].mxu0  ;;  %v176_v16 = vpop.f32.mrb[0].mxu1 }
  0xde   :  { %v102_v15 = vadd.f32 %v358_v12, %v101_v14  ;;  %v408_v17 = vpop.f32.mrb[1].mxu0  ;;  %v177_v18 = vadd.f32 %v364_v13, %v176_v16  ;;  %v416_v19 = vpop.f32.mrb[1].mxu1 }
  0xdf   :  { %v104_v20 = vpop.f32.mrb[2].mxu0  ;;  %v179_v23 = vpop.f32.mrb[2].mxu1 }
  0xe0   :  { %v382_v21 = vpack.c.bf16 %v102_v15, %v102_v15  ;;  %v105_v22 = vadd.f32 %v358_v12, %v104_v20  ;;  %v409_v24 = vpop.f32.mrb[3].mxu0  ;;  %v384_v25 = vpack.c.bf16 %v177_v18, %v177_v18  ;;  %v180_v26 = vadd.f32 %v364_v13, %v179_v23  ;;  %v417_v27 = vpop.f32.mrb[3].mxu1 }
  0xe2   :  { %117 = vst.msk [vmem:[%s600_s9] sm:$0xf] %vm116_vm2, %v382_v21  ;;  %v383_v28 = vpack.c.bf16 %v105_v22, %v105_v22  ;;  %v385_v29 = vpack.c.bf16 %v180_v26, %v180_v26 }
  0xe3   :  { %192 = vst.msk [vmem:[%s601_s10] sm:$0xf] %vm191_vm3, %v384_v25 }
  0xe4   :  { %118 = vst.msk [vmem:[%s600_s9 + $0x4] sm:$0xf] %vm116_vm2, %v383_v28 }
  0xe5   :  { %193 = vst.msk [vmem:[%s601_s10 + $0x4] sm:$0xf] %vm191_vm3, %v385_v29  ;;  %v251_v32 = vpop.f32.mrb[4].mxu0  ;;  %v325_v34 = vpop.f32.mrb[4].mxu1 }
  0xe6   :  { %v252_v33 = vadd.f32 %v370_v30, %v251_v32  ;;  %v424_v35 = vpop.f32.mrb[5].mxu0  ;;  %v326_v36 = vadd.f32 %v376_v31, %v325_v34  ;;  %v432_v37 = vpop.f32.mrb[5].mxu1 }
  0xe7   :  { %v254_v38 = vpop.f32.mrb[6].mxu0  ;;  %v328_v41 = vpop.f32.mrb[6].mxu1 }
  0xe8   :  { %v386_v39 = vpack.c.bf16 %v252_v33, %v252_v33  ;;  %v255_v40 = vadd.f32 %v370_v30, %v254_v38  ;;  %v425_v42 = vpop.f32.mrb[7].mxu0  ;;  %v388_v43 = vpack.c.bf16 %v326_v36, %v326_v36  ;;  %v329_v44 = vadd.f32 %v376_v31, %v328_v41  ;;  %v433_v45 = vpop.f32.mrb[7].mxu1 }
  0xea   :  { %266 = vst.msk [vmem:[%s604_s11] sm:$0xf] %vm116_vm2, %v386_v39  ;;  %v387_v46 = vpack.c.bf16 %v255_v40, %v255_v40  ;;  %340 = vst.msk [vmem:[%s605_s12] sm:$0xf] %vm116_vm2, %v388_v43  ;;  %v389_v47 = vpack.c.bf16 %v329_v44, %v329_v44 }
  0xec   :  { %267 = vst.msk [vmem:[%s604_s11 + $0x4] sm:$0xf] %vm116_vm2, %v387_v46  ;;  %341 = vst.msk [vmem:[%s605_s12 + $0x4] sm:$0xf] %vm116_vm2, %v389_v47 }

// kernel: decoder_layer_phase2_forward.10
= control target key start
LH: loop header
LB: loop body
LE: loop exit
PB: predicated region body
PF: predicated region fallthrough
CT: control target
= control target key end

     0   :  { %s1286_s24 = smov 0   ;;  %s1426_s0 = inlined_call_operand.vmem [shape: bf16[2,8,32], index: 0, kind: input, shape index: {}]   ;;  %s1427_s1 = inlined_call_operand.vmem [shape: bf16[2,8,64], index: 1, kind: input, shape index: {}]   ;;  %s1428_s2 = inlined_call_operand.vmem [shape: f32[2,8,32], index: 2, kind: input, shape index: {}]   ;;  %s1429_s3 = inlined_call_operand.vmem [shape: bf16[32,32], index: 3, kind: input, shape index: {}]   ;;  %s1430_s4 = inlined_call_operand.vmem [shape: f32[1,32], index: 4, kind: input, shape index: {}]   ;;  %s1431_s5 = inlined_call_operand.vmem [shape: f32[1,32], index: 5, kind: input, shape index: {}]   ;;  %s1432_s6 = inlined_call_operand.vmem [shape: f32[1,32], index: 6, kind: input, shape index: {}]   ;;  %s1433_s7 = inlined_call_operand.vmem [shape: f32[2,8,32], index: 7, kind: output, shape index: {}]  }
   0x1 LB: > { %s1068_s25 = sadd.s32 4294967295, %s1235_s24   ;;  %p1072_p0 = scmp.ge.s32.totalorder %s1235_s24, 1  ;;  %s1235_s24 = sphi %s1286_s24, %s17_s24  }
   0x2   : > { %p254_p1 = scmp.lt.s32.totalorder %s1235_s24, 3 }
   0x4   : > { %p255_p2 = pnand %p1072_p0, %p254_p1 }
   0x5   : > { %p292_p3 = scmp.lt.s32.totalorder (!%p255_p2), %s1068_s25, 1  ;;  %v1237_v0 = vmov (!%p255_p2), 0.0   ;;  %vm1238_vm0 = vmmov (!%p255_p2), 0   ;;  %vm315_vm1 = vcmask (!%p255_p2), 64512   ;;  %s1239_s10 = smov (!%p255_p2), 96   ;;  %vm382_vm2 = vcmask (!%p255_p2), 1043456  }
   0x6   : > { %258 = sbr.rel (%p255_p2) target bundleno = 3121 (0xc31), region = 48  ;;  %1120 = vmatprep.subr.bf16.mxu0 (!%p255_p2), %v1237_v0  ;;  %1122 = vmatprep.mubr.msk.bf16.mxu0 (!%p255_p2), %vm1238_vm0, %v1237_v0  ;;  %s1240_s11 = smov (!%p255_p2), 120   ;;  %v312_v41 = vld [vmem:[%s1429_s3 + $0x4] sm:$0xf] (!%p255_p2)  ;;  %v311_v45 = vld [vmem:[%s1429_s3] sm:$0xf] (!%p255_p2) }
   0x7   : > { %1126 = vmatprep.subr.bf16.mxu1 (!%p255_p2), %v1237_v0  ;;  %1128 = vmatprep.mubr.msk.bf16.mxu1 (!%p255_p2), %vm1238_vm0, %v1237_v0  ;;  %s1241_s12 = smov (!%p255_p2), 88   ;;  %s1242_s15 = smov (!%p255_p2), 112   ;;  %v545_v42 = vsel (!%p255_p2), %vm382_vm2, %v312_v41, 0  ;;  %v591_v48 = vsel (!%p255_p2), %vm382_vm2, %v311_v45, 0  ;;  %vm959_vm3 = vcmask (!%p255_p2), 261120  }
   0x8   : > { %s1243_s18 = smov (!%p255_p2), 80   ;;  %s1244_s19 = smov (!%p255_p2), 104  }
   0x9   : > { %s1245_s22 = smov (!%p255_p2), 72  }
   0xd   : > { %s1435_s25 = smov (!%p292_p3, %s1068_s25), 1 }
   0xe   : > { %s1073_s26 = sshll.u32 %s1435_s25, 2  ;;  %s1075_s27 = sshll.u32 %s1435_s25, 3 }
   0xf   : > { %s299_s29 = scalar_lea.vmem %s1427_s1, %s1073_s26  ;;  %s295_s9 = scalar_lea.vmem %s1426_s0, %s1073_s26 }
  0x10   : > { %v310_v1 = vld [vmem:[%s299_s29] sm:$0xf]  ;;  %s303_s30 = scalar_lea.vmem %s1428_s2, %s1075_s27  ;;  %s307_s16 = scalar_lea.vmem %s1433_s7, %s1075_s27 }
  0x11   : > { %v320_v2 = vsel %vm315_vm1, %v310_v1, 0  ;;  %v309_v3 = vld [vmem:[%s295_s9] sm:$0xf]  ;;  %v1315_v9 = vcombine.low %v310_v1, %v310_v1 }
  0x12   : > { %1121 = vmatpush3.bf16.xpose.msra.mxu0 %v320_v2  ;;  %v1322_v17 = vcombine.low %v309_v3, %v309_v3 }
  0x13   : > { %1138 = vmatprep.subr.bf16.mxu0 %v1237_v0  ;;  %377 = vrot.lane.b32.xlu1 %v1315_v9, %s1239_s10 }
  0x17   : > { %432 = vrot.lane.b32.xlu1 %v1315_v9, %s1240_s11 }
  0x19   : > { %1123 = vmatmul.mubr.msk.bf16.vlgmr.msra.gmra.mrb[0].mxu0 %vm315_vm1, %v309_v3 }
  0x1a   : > { %1140 = vmatprep.mubr.msk.bf16.mxu0 %vm1238_vm0, %v1237_v0 }
  0x85   : > { %v378_v15 = vpop.permute.xlu1 %377 }
  0x86   : > { %v384_v16 = vsel %vm382_vm2, %v378_v15, 0 }
  0x87   : > { %1127 = vmatpush3.bf16.msra.mxu1 %v384_v16 }
  0x88   : > { %1132 = vmatprep.subr.bf16.mxu1 %v1237_v0 }
  0x89   : > { %v433_v20 = vpop.permute.xlu1 %432 }
  0x8a   : > { %v438_v22 = vsel %vm315_vm1, %v433_v20, 0 }
  0xec   : > { %v356_v4 = vpop.f32.mrb[0].mxu0 }
  0xed   : > { %v1124_v5 = vpop.f32.mrb[1].mxu0  ;;  %v362_v6 = vsel %vm315_vm1, %v356_v4, -inf }
  0xee   : > { %363 = vmax.xlane.f32.xlu0 %v362_v6  ;;  %v359_v7 = vpop.f32.mrb[2].mxu0 }
  0xef   : > { %v1125_v8 = vpop.f32.mrb[3].mxu0 }
 0x17b   : > { %v364_v10 = vpop.xlane.xlu0 %363 }
 0x17c   : > { %v365_v11 = vsub.f32 %v356_v4, %v364_v10 }
 0x17e   : > { %v366_v12 = vmul.f32 1.442695, %v365_v11 }
 0x180   : > { %1211 = vpow2.f32 %v366_v12 }
 0x18a   : > { %v1212_v13 = vpop.eup %1211 }
 0x18b   : > { %v368_v14 = vsel %vm315_vm1, %v1212_v13, 0.0 }
 0x18c   : > { %369 = vadd.xlane.f32.xlu0 %v368_v14 }
 0x1a2   : > { %430 = vrot.lane.b32.xlu0 %v1322_v17, %s1240_s11 }
 0x219   : > { %v370_v18 = vpop.xlane.xlu0 %369 }
 0x21a   : > { %1213 = vrcp.f32 %v370_v18 }
 0x21d   : > { %v431_v24 = vpop.permute.xlu0 %430 }
 0x224   : > { %v1214_v19 = vpop.eup %1213 }
 0x225   : > { %v372_v21 = vmul.f32 %v1214_v19, %v1212_v13 }
 0x227   : > { %v373_v23 = vpack.c.bf16 %v372_v21, %v372_v21 }
 0x229   : > { %1129 = vmatmul.mubr.msk.bf16.vlgmr.msra.gmra.mrb[0].mxu1 %vm315_vm1, %v373_v23 }
 0x22a   : > { %1133 = vmatpush3.bf16.xpose.msra.mxu1 %v438_v22  ;;  %1134 = vmatprep.mubr.msk.bf16.mxu1 %vm1238_vm0, %v1237_v0 }
 0x22b   : > { %1144 = vmatprep.subr.bf16.mxu1 %v1237_v0 }
 0x231   : > { %1135 = vmatmul.mubr.msk.bf16.vlgmr.msra.gmra.mrb[4].mxu1 %vm315_vm1, %v431_v24  ;;  %v313_v24 = vld [vmem:[%s1429_s3 + $0x8] sm:$0xf] }
 0x232   : > { %1146 = vmatprep.mubr.msk.bf16.mxu1 %vm1238_vm0, %v1237_v0  ;;  %1145 = vmatpush3.bf16.msra.mxu1 %v545_v42  ;;  %v314_v42 = vld [vmem:[%s1429_s3 + $0xc] sm:$0xf] }
 0x233   : > { %1156 = vmatprep.subr.bf16.mxu1 %v1237_v0 }
 0x2fc   : > { %v420_v25 = vpop.f32.mrb[0].mxu1 }
 0x2fd   : > { %v1130_v26 = vpop.f32.mrb[1].mxu1  ;;  %v426_v49 = vpack.c.bf16 %v420_v25, %v420_v25  ;;  %v748_v25 = vsel %vm382_vm2, %v313_v24, 0 }
 0x2fe   : > { %v423_v27 = vpop.f32.mrb[2].mxu1 }
 0x2ff   : > { %v1131_v28 = vpop.f32.mrb[3].mxu1 }
 0x304   : > { %v474_v29 = vpop.f32.mrb[4].mxu1 }
 0x305   : > { %v1136_v30 = vpop.f32.mrb[5].mxu1  ;;  %v480_v31 = vsel %vm315_vm1, %v474_v29, -inf }
 0x306   : > { %481 = vmax.xlane.f32.xlu1 %v480_v31  ;;  %v477_v32 = vpop.f32.mrb[6].mxu1 }
 0x307   : > { %v1137_v33 = vpop.f32.mrb[7].mxu1 }
 0x317   : > { %492 = vrot.lane.b32.xlu1 %v1315_v9, %s1241_s12 }
 0x31b   : > { %633 = vrot.lane.b32.xlu1 %v1322_v17, %s1242_s15 }
 0x393   : > { %v482_v34 = vpop.xlane.xlu1 %481 }
 0x394   : > { %v483_v35 = vsub.f32 %v474_v29, %v482_v34 }
 0x396   : > { %v484_v36 = vmul.f32 1.442695, %v483_v35 }
 0x397   : > { %v493_v39 = vpop.permute.xlu1 %492 }
 0x398   : > { %1215 = vpow2.f32 %v484_v36  ;;  %v498_v40 = vsel %vm382_vm2, %v493_v39, 0 }
 0x399   : > { %1139 = vmatpush3.bf16.msra.mxu0 %v498_v40 }
 0x39a   : > { %1150 = vmatprep.subr.bf16.mxu0 %v1237_v0 }
 0x39b   : > { %v634_v58 = vpop.permute.xlu1 %633 }
 0x3a2   : > { %v1216_v37 = vpop.eup %1215 }
 0x3a3   : > { %v486_v38 = vsel %vm315_vm1, %v1216_v37, 0.0 }
 0x3a4   : > { %487 = vadd.xlane.f32.xlu0 %v486_v38 }
 0x3ba   : > { %635 = vrot.lane.b32.xlu0 %v1315_v9, %s1242_s15 }
 0x431   : > { %v488_v43 = vpop.xlane.xlu0 %487 }
 0x432   : > { %1217 = vrcp.f32 %v488_v43  ;;  %v906_v43 = vsel %vm382_vm2, %v314_v42, 0 }
 0x435   : > { %v636_v50 = vpop.permute.xlu0 %635 }
 0x436   : > { %v641_v53 = vsel %vm315_vm1, %v636_v50, 0 }
 0x43c   : > { %v1218_v44 = vpop.eup %1217 }
 0x43d   : > { %v490_v46 = vmul.f32 %v1218_v44, %v1216_v37 }
 0x43f   : > { %v491_v47 = vpack.c.bf16 %v490_v46, %v490_v46 }
 0x441   : > { %1141 = vmatmul.mubr.msk.bf16.vlgmr.msra.gmra.mrb[4].mxu0 %vm315_vm1, %v491_v47 }
 0x442   : > { %1151 = vmatpush3.bf16.msra.mxu0 %v591_v48  ;;  %1152 = vmatprep.mubr.msk.bf16.mxu0 %vm1238_vm0, %v1237_v0 }
 0x443   : > { %1162 = vmatprep.subr.bf16.mxu0 %v1237_v0 }
 0x449   : > { %1153 = vmatmul.mubr.msk.bf16.vlgmr.msra.gmra.mrb[8].mxu0 %vm315_vm1, %v426_v49 }
 0x44a   : > { %1164 = vmatprep.mubr.msk.bf16.mxu0 %vm1238_vm0, %v1237_v0 }
 0x514   : > { %v534_v51 = vpop.f32.mrb[4].mxu0 }
 0x515   : > { %v540_v52 = vpack.c.bf16 %v534_v51, %v534_v51  ;;  %v1142_v54 = vpop.f32.mrb[5].mxu0 }
 0x516   : > { %v537_v55 = vpop.f32.mrb[6].mxu0 }
 0x517   : > { %v1143_v56 = vpop.f32.mrb[7].mxu0  ;;  %1147 = vmatmul.mubr.msk.bf16.vlgmr.msra.gmra.mrb[8].mxu1 %vm315_vm1, %v540_v52 }
 0x518   : > { %1157 = vmatpush3.bf16.xpose.msra.mxu1 %v641_v53  ;;  %1158 = vmatprep.mubr.msk.bf16.mxu1 %vm1238_vm0, %v1237_v0 }
 0x519   : > { %1168 = vmatprep.subr.bf16.mxu1 %v1237_v0 }
 0x51c   : > { %v627_v57 = vpop.f32.mrb[8].mxu0 }
 0x51d   : > { %v1154_v59 = vpop.f32.mrb[9].mxu0 }
 0x51e   : > { %v630_v60 = vpop.f32.mrb[10].mxu0 }
 0x51f   : > { %v1155_v61 = vpop.f32.mrb[11].mxu0  ;;  %1159 = vmatmul.mubr.msk.bf16.vlgmr.msra.gmra.mrb[12].mxu1 %vm315_vm1, %v634_v58  ;;  %v1091_v58 = vld [vmem:[%s1430_s4] ss:$0 sm:$0xff] }
 0x520   : > { %1170 = vmatprep.mubr.msk.bf16.mxu1 %vm1238_vm0, %v1237_v0  ;;  %1169 = vmatpush3.bf16.msra.mxu1 %v748_v25 }
 0x521   : > { %1180 = vmatprep.subr.bf16.mxu1 %v1237_v0 }
 0x5ea   : > { %v581_v62 = vpop.f32.mrb[8].mxu1 }
 0x5eb   : > { %v1364_v63 = vadd.f32 %v627_v57, %v581_v62  ;;  %v1148_v1 = vpop.f32.mrb[9].mxu1  ;;  %v957_v62 = vld [vmem:[%s303_s30] sm:$0xff] }
 0x5ec   : > { %v584_v2 = vpop.f32.mrb[10].mxu1 }
 0x5ed   : > { %v1149_v3 = vpop.f32.mrb[11].mxu1 }
 0x5f2   : > { %v677_v4 = vpop.f32.mrb[12].mxu1 }
 0x5f3   : > { %v1160_v5 = vpop.f32.mrb[13].mxu1  ;;  %v683_v6 = vsel %vm315_vm1, %v677_v4, -inf }
 0x5f4   : > { %684 = vmax.xlane.f32.xlu1 %v683_v6  ;;  %v680_v7 = vpop.f32.mrb[14].mxu1 }
 0x5f5   : > { %v1161_v8 = vpop.f32.mrb[15].mxu1 }
 0x605   : > { %695 = vrot.lane.b32.xlu1 %v1315_v9, %s1243_s18 }
 0x609   : > { %791 = vrot.lane.b32.xlu1 %v1322_v17, %s1244_s19 }
 0x681   : > { %v685_v10 = vpop.xlane.xlu1 %684 }
 0x682   : > { %v686_v11 = vsub.f32 %v677_v4, %v685_v10 }
 0x684   : > { %v687_v12 = vmul.f32 1.442695, %v686_v11 }
 0x685   : > { %v696_v15 = vpop.permute.xlu1 %695 }
 0x686   : > { %1219 = vpow2.f32 %v687_v12  ;;  %v701_v16 = vsel %vm382_vm2, %v696_v15, 0 }
 0x687   : > { %1163 = vmatpush3.bf16.msra.mxu0 %v701_v16  ;;  %v1093_v16 = vld [vmem:[%s1432_s6] ss:$0 sm:$0xff] }
 0x688   : > { %1174 = vmatprep.subr.bf16.mxu0 %v1237_v0 }
 0x689   : > { %v792_v23 = vpop.permute.xlu1 %791 }
 0x690   : > { %v1220_v13 = vpop.eup %1219 }
 0x691   : > { %v689_v14 = vsel %vm315_vm1, %v1220_v13, 0.0 }
 0x692   : > { %690 = vadd.xlane.f32.xlu0 %v689_v14  ;;  %v1092_v14 = vld [vmem:[%s1431_s5] ss:$0 sm:$0xff] }
 0x6a8   : > { %793 = vrot.lane.b32.xlu0 %v1315_v9, %s1244_s19 }
 0x71f   : > { %v691_v18 = vpop.xlane.xlu0 %690 }
 0x720   : > { %1221 = vrcp.f32 %v691_v18 }
 0x723   : > { %v794_v17 = vpop.permute.xlu0 %793 }
 0x724   : > { %v799_v21 = vsel %vm315_vm1, %v794_v17, 0 }
 0x72a   : > { %v1222_v19 = vpop.eup %1221 }
 0x72b   : > { %v693_v20 = vmul.f32 %v1222_v19, %v1220_v13 }
 0x72d   : > { %v694_v22 = vpack.c.bf16 %v693_v20, %v693_v20 }
 0x72f   : > { %1165 = vmatmul.mubr.msk.bf16.vlgmr.msra.gmra.mrb[12].mxu0 %vm315_vm1, %v694_v22 }
 0x730   : > { %1175 = vmatpush3.bf16.xpose.msra.mxu0 %v799_v21  ;;  %1176 = vmatprep.mubr.msk.bf16.mxu0 %vm1238_vm0, %v1237_v0 }
 0x731   : > { %1186 = vmatprep.subr.bf16.mxu0 %v1237_v0 }
 0x737   : > { %1177 = vmatmul.mubr.msk.bf16.vlgmr.msra.gmra.mrb[16].mxu0 %vm315_vm1, %v792_v23 }
 0x738   : > { %1188 = vmatprep.mubr.msk.bf16.mxu0 %vm1238_vm0, %v1237_v0  ;;  %1187 = vmatpush3.bf16.msra.mxu0 %v906_v43 }
 0x802   : > { %v737_v26 = vpop.f32.mrb[12].mxu0 }
 0x803   : > { %v743_v27 = vpack.c.bf16 %v737_v26, %v737_v26  ;;  %v1166_v28 = vpop.f32.mrb[13].mxu0 }
 0x804   : > { %v740_v29 = vpop.f32.mrb[14].mxu0 }
 0x805   : > { %v1167_v30 = vpop.f32.mrb[15].mxu0  ;;  %1171 = vmatmul.mubr.msk.bf16.vlgmr.msra.gmra.mrb[16].mxu1 %vm315_vm1, %v743_v27 }
 0x806   : > { %1182 = vmatprep.mubr.msk.bf16.mxu1 %vm1238_vm0, %v1237_v0 }
 0x80a   : > { %v835_v31 = vpop.f32.mrb[16].mxu0 }
 0x80b   : > { %v1178_v32 = vpop.f32.mrb[17].mxu0  ;;  %v841_v33 = vsel %vm315_vm1, %v835_v31, -inf }
 0x80c   : > { %842 = vmax.xlane.f32.xlu1 %v841_v33  ;;  %v838_v34 = vpop.f32.mrb[18].mxu0 }
 0x80d   : > { %v1179_v35 = vpop.f32.mrb[19].mxu0 }
 0x81d   : > { %853 = vrot.lane.b32.xlu1 %v1315_v9, %s1245_s22 }
 0x899   : > { %v843_v36 = vpop.xlane.xlu1 %842 }
 0x89a   : > { %v844_v37 = vsub.f32 %v835_v31, %v843_v36 }
 0x89c   : > { %v845_v38 = vmul.f32 1.442695, %v844_v37 }
 0x89d   : > { %v854_v41 = vpop.permute.xlu1 %853 }
 0x89e   : > { %1223 = vpow2.f32 %v845_v38  ;;  %v859_v0 = vsel %vm382_vm2, %v854_v41, 0 }
 0x89f   : > { %1181 = vmatpush3.bf16.msra.mxu1 %v859_v0 }
 0x8a8   : > { %v1224_v39 = vpop.eup %1223 }
 0x8a9   : > { %v847_v40 = vsel %vm315_vm1, %v1224_v39, 0.0 }
 0x8aa   : > { %848 = vadd.xlane.f32.xlu0 %v847_v40 }
 0x8d8   : > { %v784_v9 = vpop.f32.mrb[16].mxu1 }
 0x8d9   : > { %v790_v44 = vadd.f32 %v784_v9, %v1364_v63  ;;  %v1172_v45 = vpop.f32.mrb[17].mxu1 }
 0x8da   : > { %v787_v46 = vpop.f32.mrb[18].mxu1 }
 0x8db   : > { %v1173_v47 = vpop.f32.mrb[19].mxu1 }
 0x937   : > { %v849_v48 = vpop.xlane.xlu0 %848 }
 0x938   : > { %1225 = vrcp.f32 %v849_v48 }
 0x942   : > { %v1226_v49 = vpop.eup %1225 }
 0x943   : > { %v851_v50 = vmul.f32 %v1226_v49, %v1224_v39 }
 0x945   : > { %v852_v51 = vpack.c.bf16 %v851_v50, %v851_v50 }
 0x947   : > { %1183 = vmatmul.mubr.msk.bf16.vlgmr.msra.gmra.mrb[20].mxu1 %vm315_vm1, %v852_v51 }
 0xa1a   : > { %v895_v52 = vpop.f32.mrb[20].mxu1 }
 0xa1b   : > { %v901_v53 = vpack.c.bf16 %v895_v52, %v895_v52  ;;  %v1184_v54 = vpop.f32.mrb[21].mxu1 }
 0xa1c   : > { %v898_v55 = vpop.f32.mrb[22].mxu1 }
 0xa1d   : > { %v1185_v56 = vpop.f32.mrb[23].mxu1  ;;  %1189 = vmatmul.mubr.msk.bf16.vlgmr.msra.gmra.mrb[20].mxu0 %vm315_vm1, %v901_v53 }
 0xaf0   : > { %v942_v57 = vpop.f32.mrb[20].mxu0 }
 0xaf1   : > { %v948_v59 = vadd.f32 %v942_v57, %v790_v44  ;;  %v1190_v60 = vpop.f32.mrb[21].mxu0 }
 0xaf2   : > { %v945_v61 = vpop.f32.mrb[22].mxu0 }
 0xaf3   : > { %v956_v63 = vadd.f32 %v1091_v58, %v948_v59  ;;  %v1191_v1 = vpop.f32.mrb[23].mxu0 }
 0xaf5   : > { %v958_v2 = vadd.f32 %v957_v62, %v956_v63 }
 0xaf7   : > { %v960_v3 = vsel %vm959_vm3, %v958_v2, 0.0 }
 0xaf8   : > { %961 = vadd.xlane.f32.xlu0 %v960_v3 }
 0xb85   : > { %v962_v4 = vpop.xlane.xlu0 %961 }
 0xb86   : > { %v964_v5 = vmul.f32 0.03125, %v962_v4 }
 0xb88   : > { %v965_v6 = vsub.f32 %v958_v2, %v964_v5 }
 0xb8a   : > { %v966_v7 = vmul.f32 %v965_v6, %v965_v6 }
 0xb8c   : > { %v967_v8 = vsel %vm959_vm3, %v966_v7, 0.0 }
 0xb8d   : > { %968 = vadd.xlane.f32.xlu0 %v967_v8 }
 0xc1a   : > { %v969_v10 = vpop.xlane.xlu0 %968 }
 0xc1b   : > { %v970_v11 = vmul.f32 0.03125, %v969_v10 }
 0xc1d   : > { %v971_v12 = vadd.f32 1e-05, %v970_v11 }
 0xc1f   : > { %1227 = vrsqrt.f32 %v971_v12 }
 0xc29   : > { %v1228_v13 = vpop.eup %1227 }
 0xc2a   : > { %v973_v15 = vmul.f32 %v1228_v13, %v965_v6 }
 0xc2c   : > { %v981_v18 = vmul.f32 %v1092_v14, %v973_v15 }
 0xc2e   : > { %v989_v19 = vadd.f32 %v1093_v16, %v981_v18 }
 0xc30   : > { %990 = vst.msk [vmem:[%s307_s16] sm:$0xff] %vm959_vm3, %v989_v19 }
 0xc31 PF: > { %s17_s24 = sadd.s32 1, %s1235_s24  }
 0xc32   : > { %p14_p4 = scmp.ge.s32.totalorder %s17_s24, 4  }
 0xc34   :  { %16 = sbr.rel (!%p14_p4) target bundleno = 1 (0x1), region = 84 }

// kernel: decoder_layer_phase2_forward.9
= control target key start
LH: loop header
LB: loop body
LE: loop exit
PB: predicated region body
PF: predicated region fallthrough
CT: control target
= control target key end

     0   :  { %v124_v0 = vmov 0.0   ;;  %vm125_vm0 = vmmov 0   ;;  %vm41_vm1 = vcmask 261120   ;;  %vm94_vm2 = vcmask 519168   ;;  %s167_s1 = inlined_call_operand.vmem [shape: bf16[32,64], index: 1, kind: input, shape index: {}]   ;;  %s168_s0 = inlined_call_operand.vmem [shape: f32[16,32], index: 0, kind: input, shape index: {}]   ;;  %s169_s2 = inlined_call_operand.vmem [shape: f32[1,64], index: 2, kind: input, shape index: {}]   ;;  %s170_s3 = inlined_call_operand.vmem [shape: bf16[16,64], index: 3, kind: output, shape index: {}]  }
   0x1   :  { %112 = vmatprep.subr.bf16.mxu0 %v124_v0  ;;  %v122_v1 = vld [vmem:[%s167_s1] sm:$0xff]   ;;  %116 = vmatprep.mubr.msk.bf16.mxu0 %vm125_vm0, %v124_v0  ;;  %v123_v2 = vld [vmem:[%s167_s1 + $0x8] sm:$0xff]  }
   0x2   :  { %113 = vmatpush3.bf16.msra.mxu0 %v122_v1  ;;  %v15_v3 = vld [vmem:[%s168_s0] sm:$0xff]  ;;  %v16_v4 = vld [vmem:[%s168_s0 + $0x8] sm:$0xff] }
   0x3   :  { %114 = vmatprep.subr.bf16.mxu0 %v124_v0  ;;  %v17_v5 = vpack.c.bf16 %v16_v4, %v15_v3  ;;  %v101_v6 = vld [vmem:[%s169_s2] ss:$0 sm:$0xff] }
   0x6   :  { %115 = vmatpush3.bf16.msra.mxu0 %v123_v2 }
   0x9   :  { %117 = vmatmul.mubr.msk.bf16.vlgmr.msra.gmra.mrb[0].mxu0 %vm41_vm1, %v17_v5 }
  0xdc   :  { %v79_v7 = vpop.f32.mrb[0].mxu0 }
  0xdd   :  { %v80_v8 = vadd.f32 %v101_v6, %v79_v7  ;;  %v118_v9 = vpop.f32.mrb[1].mxu0 }
  0xde   :  { %v82_v10 = vpop.f32.mrb[2].mxu0 }
  0xdf   :  { %v107_v11 = vpack.c.bf16 %v80_v8, %v80_v8  ;;  %v83_v12 = vadd.f32 %v101_v6, %v82_v10  ;;  %v119_v13 = vpop.f32.mrb[3].mxu0 }
  0xe1   :  { %95 = vst.msk [vmem:[%s170_s3] sm:$0xf] %vm94_vm2, %v107_v11  ;;  %v108_v14 = vpack.c.bf16 %v83_v12, %v83_v12 }
  0xe3   :  { %96 = vst.msk [vmem:[%s170_s3 + $0x4] sm:$0xf] %vm94_vm2, %v108_v14 }

// kernel: decoder_layer_phase2_forward.12
= control target key start
LH: loop header
LB: loop body
LE: loop exit
PB: predicated region body
PF: predicated region fallthrough
CT: control target
= control target key end

     0   :  { %14 = vsyncpa [#allocation3], 0  ;;  %s1708_s0 = inlined_call_operand.vmem [shape: bf16[2,8,32], index: 0, kind: input, shape index: {}]   ;;  %s1709_s1 = inlined_call_operand.vmem [shape: bf16[2,8,64], index: 1, kind: input, shape index: {}]   ;;  %s1710_s2 = inlined_call_operand.vmem [shape: f32[2,8,32], index: 2, kind: input, shape index: {}]   ;;  %s1711_s3 = inlined_call_operand.vmem [shape: bf16[32,32], index: 3, kind: input, shape index: {}]   ;;  %s1712_s4 = inlined_call_operand.vmem [shape: f32[1,32], index: 4, kind: input, shape index: {}]   ;;  %s1713_s5 = inlined_call_operand.vmem [shape: f32[1,32], index: 5, kind: input, shape index: {}]   ;;  %s1714_s6 = inlined_call_operand.vmem [shape: f32[1,32], index: 6, kind: input, shape index: {}]   ;;  %s1715_s7 = inlined_call_operand.vmem [shape: f32[2,8,32], index: 7, kind: output, shape index: {0}]   ;;  %s1716_s8 = inlined_call_operand.hbm [shape: f32[2,8,8], index: 8, kind: output, shape index: {1}]  }
   0x1   :  { %16 = vsyncpa [#allocation3 + $0x1], 0  ;;  %s1475_s27 = smov 0   ;;  %s1477_s28 = smov 0  }
   0x2   :  { %s1479_s29 = smov 0   ;;  %s1481_s30 = smov 0  }
   0x3 LB: > { %s1496_s9 = sadd.s32 4294967295, %s1418_s30   ;;  %s1162_s10 = sadd.s32 4294967294, %s1418_s30   ;;  %s1418_s30 = sphi %s1481_s30, %s1724_s30   ;;  %s1414_s29 = sphi %s1479_s29, %s1723_s29   ;;  %s1410_s28 = sphi %s1477_s28, %s1722_s28   ;;  %s1406_s27 = sphi %s1475_s27, %s1721_s27  }
   0x4   : > { %s1500_s11 = sadd.s32 1, %s1418_s30   ;;  %s217_s12 = sadd.s32 1, %s1414_s29 }
   0x5   : > { %s214_s13 = ssub.s32 %s1418_s30, %s1500_s11  ;;  %p227_p0 = scmp.ne.s32.totalorder %s1414_s29, %s1410_s28 }
   0x6   : > { %p215_p1 = scmp.eq.s32.totalorder %s214_s13, 0  ;;  %p228_p2 = scmp.eq.s32.totalorder %s1496_s9, 1 }
   0x7   : > { %p233_p3 = scmp.ne.s32.totalorder %s1410_s28, %s1406_s27  ;;  %p234_p4 = scmp.eq.s32.totalorder %s1162_s10, 1 }
   0x8   : > { %s1511_s14 = scalar_select %p215_p1, %s1414_s29, %s217_s12  }
   0x9   : > { %p1513_p5 = por %p228_p2, %p227_p0  ;;  %p1517_p6 = por %p234_p4, %p233_p3 }
   0xa   : > { %p1165_p7 = scmp.ge.s32.totalorder %s1418_s30, 1  ;;  %p285_p8 = scmp.lt.s32.totalorder %s1418_s30, 3 }
   0xc   : > { %p286_p9 = pnand %p1165_p7, %p285_p8 }
   0xd   : > { %p330_p10 = scmp.lt.s32.totalorder (!%p286_p9), %s1496_s9, 1  ;;  %v1420_v0 = vmov (!%p286_p9), 0.0   ;;  %vm1421_vm0 = vmmov (!%p286_p9), 0   ;;  %vm353_vm1 = vcmask (!%p286_p9), 64512   ;;  %s1422_s25 = smov (!%p286_p9), 96   ;;  %vm420_vm2 = vcmask (!%p286_p9), 1043456  }
   0xe   : > { %289 = sbr.rel (%p286_p9) target bundleno = 3130 (0xc3a), region = 48  ;;  %1216 = vmatprep.subr.bf16.mxu0 (!%p286_p9), %v1420_v0  ;;  %1218 = vmatprep.mubr.msk.bf16.mxu0 (!%p286_p9), %vm1421_vm0, %v1420_v0  ;;  %s1423_s26 = smov (!%p286_p9), 120   ;;  %v350_v41 = vld [vmem:[%s1711_s3 + $0x4] sm:$0xf] (!%p286_p9)  ;;  %v349_v45 = vld [vmem:[%s1711_s3] sm:$0xf] (!%p286_p9) }
   0xf   : > { %1222 = vmatprep.subr.bf16.mxu1 (!%p286_p9), %v1420_v0  ;;  %1224 = vmatprep.mubr.msk.bf16.mxu1 (!%p286_p9), %vm1421_vm0, %v1420_v0  ;;  %s1424_s10 = smov (!%p286_p9), 88   ;;  %v583_v42 = vsel (!%p286_p9), %vm420_vm2, %v350_v41, 0  ;;  %v629_v48 = vsel (!%p286_p9), %vm420_vm2, %v349_v45, 0  ;;  %s1427_s22 = smov (!%p286_p9), 104   ;;  %vm1000_vm3 = vcmask (!%p286_p9), 261120  }
  0x10   : > { %s327_s12 = sand.u32 (!%p286_p9), 1, %s1410_s28   ;;  %s1429_s23 = smov (!%p286_p9), [#allocation2]  }
  0x11   : > { %s1637_s13 = sshll.u32 (!%p286_p9), %s327_s12, 3 }
  0x15   : > { %s1528_s17 = scalar_select %p330_p10, %s1496_s9, 1 }
  0x17   : > { %s1167_s18 = sshll.u32 %s1528_s17, 2  ;;  %s1717_s19 = sshll.u32 %s1528_s17, 3 }
  0x18   : > { %s337_s21 = scalar_lea.vmem %s1709_s1, %s1167_s18  ;;  %s333_s24 = scalar_lea.vmem %s1708_s0, %s1167_s18 }
  0x19   : > { %v348_v1 = vld [vmem:[%s337_s21] sm:$0xf]  ;;  %s1425_s18 = smov 112   ;;  %s1426_s21 = smov 80  }
  0x1a   : > { %v358_v2 = vsel %vm353_vm1, %v348_v1, 0  ;;  %v347_v3 = vld [vmem:[%s333_s24] sm:$0xf]  ;;  %v1546_v9 = vcombine.low %v348_v1, %v348_v1  ;;  %s1360_s24 = sshll.u32 %s1429_s23, 4  ;;  %s1361_s24 = int_to_ptr.vmem [resolvable:$false] %s1360_s24 }
  0x1b   : > { %1217 = vmatpush3.bf16.xpose.msra.mxu0 %v358_v2  ;;  %v1553_v17 = vcombine.low %v347_v3, %v347_v3 }
  0x1c   : > { %1234 = vmatprep.subr.bf16.mxu0 %v1420_v0  ;;  %415 = vrot.lane.b32.xlu1 %v1546_v9, %s1422_s25  ;;  %s1428_s25 = smov 72  }
  0x20   : > { %470 = vrot.lane.b32.xlu1 %v1546_v9, %s1423_s26 }
  0x22   : > { %1219 = vmatmul.mubr.msk.bf16.vlgmr.msra.gmra.mrb[0].mxu0 %vm353_vm1, %v347_v3 }
  0x23   : > { %1236 = vmatprep.mubr.msk.bf16.mxu0 %vm1421_vm0, %v1420_v0 }
  0x8e   : > { %v416_v15 = vpop.permute.xlu1 %415 }
  0x8f   : > { %v422_v16 = vsel %vm420_vm2, %v416_v15, 0 }
  0x90   : > { %1223 = vmatpush3.bf16.msra.mxu1 %v422_v16 }
  0x91   : > { %1228 = vmatprep.subr.bf16.mxu1 %v1420_v0 }
  0x92   : > { %v471_v20 = vpop.permute.xlu1 %470 }
  0x93   : > { %v476_v22 = vsel %vm353_vm1, %v471_v20, 0 }
  0xf5   : > { %v394_v4 = vpop.f32.mrb[0].mxu0 }
  0xf6   : > { %v1220_v5 = vpop.f32.mrb[1].mxu0  ;;  %v400_v6 = vsel %vm353_vm1, %v394_v4, -inf }
  0xf7   : > { %401 = vmax.xlane.f32.xlu0 %v400_v6  ;;  %v397_v7 = vpop.f32.mrb[2].mxu0 }
  0xf8   : > { %v1221_v8 = vpop.f32.mrb[3].mxu0 }
 0x184   : > { %v402_v10 = vpop.xlane.xlu0 %401 }
 0x185   : > { %v403_v11 = vsub.f32 %v394_v4, %v402_v10 }
 0x187   : > { %v404_v12 = vmul.f32 1.442695, %v403_v11 }
 0x189   : > { %1338 = vpow2.f32 %v404_v12 }
 0x193   : > { %v1339_v13 = vpop.eup %1338 }
 0x194   : > { %v406_v14 = vsel %vm353_vm1, %v1339_v13, 0.0 }
 0x195   : > { %407 = vadd.xlane.f32.xlu0 %v406_v14 }
 0x1ab   : > { %468 = vrot.lane.b32.xlu0 %v1553_v17, %s1423_s26 }
 0x222   : > { %v408_v18 = vpop.xlane.xlu0 %407 }
 0x223   : > { %1340 = vrcp.f32 %v408_v18 }
 0x226   : > { %v469_v24 = vpop.permute.xlu0 %468 }
 0x22d   : > { %v1341_v19 = vpop.eup %1340 }
 0x22e   : > { %v1556_v21 = vmul.f32 %v1341_v19, %v1339_v13 }
 0x230   : > { %v411_v23 = vpack.c.bf16 %v1556_v21, %v1556_v21 }
 0x232   : > { %1225 = vmatmul.mubr.msk.bf16.vlgmr.msra.gmra.mrb[0].mxu1 %vm353_vm1, %v411_v23 }
 0x233   : > { %1229 = vmatpush3.bf16.xpose.msra.mxu1 %v476_v22  ;;  %1230 = vmatprep.mubr.msk.bf16.mxu1 %vm1421_vm0, %v1420_v0 }
 0x234   : > { %1240 = vmatprep.subr.bf16.mxu1 %v1420_v0 }
 0x23a   : > { %1231 = vmatmul.mubr.msk.bf16.vlgmr.msra.gmra.mrb[4].mxu1 %vm353_vm1, %v469_v24 }
 0x23b   : > { %1242 = vmatprep.mubr.msk.bf16.mxu1 %vm1421_vm0, %v1420_v0  ;;  %1241 = vmatpush3.bf16.msra.mxu1 %v583_v42 }
 0x23c   : > { %1252 = vmatprep.subr.bf16.mxu1 %v1420_v0 }
 0x305   : > { %v458_v25 = vpop.f32.mrb[0].mxu1 }
 0x306   : > { %v1226_v26 = vpop.f32.mrb[1].mxu1  ;;  %v464_v49 = vpack.c.bf16 %v458_v25, %v458_v25 }
 0x307   : > { %v461_v27 = vpop.f32.mrb[2].mxu1 }
 0x308   : > { %v1227_v28 = vpop.f32.mrb[3].mxu1 }
 0x30d   : > { %v512_v29 = vpop.f32.mrb[4].mxu1 }
 0x30e   : > { %v1232_v30 = vpop.f32.mrb[5].mxu1  ;;  %v518_v31 = vsel %vm353_vm1, %v512_v29, -inf }
 0x30f   : > { %519 = vmax.xlane.f32.xlu1 %v518_v31  ;;  %v515_v32 = vpop.f32.mrb[6].mxu1 }
 0x310   : > { %v1233_v33 = vpop.f32.mrb[7].mxu1 }
 0x320   : > { %530 = vrot.lane.b32.xlu1 %v1546_v9, %s1424_s10 }
 0x324   : > { %672 = vrot.lane.b32.xlu1 %v1553_v17, %s1425_s18 }
 0x39c   : > { %v520_v34 = vpop.xlane.xlu1 %519 }
 0x39d   : > { %v521_v35 = vsub.f32 %v512_v29, %v520_v34 }
 0x39f   : > { %v522_v36 = vmul.f32 1.442695, %v521_v35 }
 0x3a0   : > { %v531_v39 = vpop.permute.xlu1 %530 }
 0x3a1   : > { %1342 = vpow2.f32 %v522_v36  ;;  %v536_v40 = vsel %vm420_vm2, %v531_v39, 0 }
 0x3a2   : > { %1235 = vmatpush3.bf16.msra.mxu0 %v536_v40 }
 0x3a3   : > { %1246 = vmatprep.subr.bf16.mxu0 %v1420_v0 }
 0x3a4   : > { %v673_v58 = vpop.permute.xlu1 %672 }
 0x3ab   : > { %v1343_v37 = vpop.eup %1342 }
 0x3ac   : > { %v524_v38 = vsel %vm353_vm1, %v1343_v37, 0.0 }
 0x3ad   : > { %525 = vadd.xlane.f32.xlu0 %v524_v38 }
 0x3c3   : > { %674 = vrot.lane.b32.xlu0 %v1546_v9, %s1425_s18  ;;  %s329_s18 = scalar_lea.vmem [#allocation2], %s1637_s13 }
 0x3c4   : > { %s1055_s26 = sshll.u32 %s329_s18, 4  ;;  %s1056_s26 = int_to_ptr.vmem [resolvable:$true] %s1055_s26 }
 0x3c5   : > { %p1363_p0 = scmp.lt.s32.totalorder %s1056_s26, %s1361_s24 }
 0x43a   : > { %v526_v43 = vpop.xlane.xlu0 %525 }
 0x43b   : > { %1344 = vrcp.f32 %v526_v43 }
 0x43e   : > { %v675_v50 = vpop.permute.xlu0 %674 }
 0x43f   : > { %v680_v53 = vsel %vm353_vm1, %v675_v50, 0 }
 0x445   : > { %v1345_v44 = vpop.eup %1344 }
 0x446   : > { %v528_v46 = vmul.f32 %v1345_v44, %v1343_v37  ;;  %v352_v44 = vld [vmem:[%s1711_s3 + $0xc] sm:$0xf] }
 0x448   : > { %v529_v47 = vpack.c.bf16 %v528_v46, %v528_v46  ;;  %v671_v22 = vadd.f32 %v528_v46, %v1556_v21  ;;  %v351_v21 = vld [vmem:[%s1711_s3 + $0x8] sm:$0xf] }
 0x449   : > { %v787_v27 = vsel %vm420_vm2, %v351_v21, 0 }
 0x44a   : > { %1237 = vmatmul.mubr.msk.bf16.vlgmr.msra.gmra.mrb[4].mxu0 %vm353_vm1, %v529_v47 }
 0x44b   : > { %1247 = vmatpush3.bf16.msra.mxu0 %v629_v48  ;;  %1248 = vmatprep.mubr.msk.bf16.mxu0 %vm1421_vm0, %v1420_v0 }
 0x44c   : > { %1258 = vmatprep.subr.bf16.mxu0 %v1420_v0 }
 0x452   : > { %1249 = vmatmul.mubr.msk.bf16.vlgmr.msra.gmra.mrb[8].mxu0 %vm353_vm1, %v464_v49 }
 0x453   : > { %1260 = vmatprep.mubr.msk.bf16.mxu0 %vm1421_vm0, %v1420_v0 }
 0x51d   : > { %v572_v51 = vpop.f32.mrb[4].mxu0 }
 0x51e   : > { %v578_v52 = vpack.c.bf16 %v572_v51, %v572_v51  ;;  %v1238_v54 = vpop.f32.mrb[5].mxu0 }
 0x51f   : > { %v575_v55 = vpop.f32.mrb[6].mxu0 }
 0x520   : > { %v1239_v56 = vpop.f32.mrb[7].mxu0  ;;  %1243 = vmatmul.mubr.msk.bf16.vlgmr.msra.gmra.mrb[8].mxu1 %vm353_vm1, %v578_v52 }
 0x521   : > { %1253 = vmatpush3.bf16.xpose.msra.mxu1 %v680_v53  ;;  %1254 = vmatprep.mubr.msk.bf16.mxu1 %vm1421_vm0, %v1420_v0 }
 0x522   : > { %1264 = vmatprep.subr.bf16.mxu1 %v1420_v0 }
 0x525   : > { %v665_v57 = vpop.f32.mrb[8].mxu0 }
 0x526   : > { %v1250_v59 = vpop.f32.mrb[9].mxu0 }
 0x527   : > { %v668_v60 = vpop.f32.mrb[10].mxu0 }
 0x528   : > { %v1251_v61 = vpop.f32.mrb[11].mxu0  ;;  %1255 = vmatmul.mubr.msk.bf16.vlgmr.msra.gmra.mrb[12].mxu1 %vm353_vm1, %v673_v58 }
 0x529   : > { %1266 = vmatprep.mubr.msk.bf16.mxu1 %vm1421_vm0, %v1420_v0  ;;  %1265 = vmatpush3.bf16.msra.mxu1 %v787_v27 }
 0x52a   : > { %1276 = vmatprep.subr.bf16.mxu1 %v1420_v0 }
 0x5f3   : > { %v619_v62 = vpop.f32.mrb[8].mxu1 }
 0x5f4   : > { %v1599_v63 = vadd.f32 %v665_v57, %v619_v62  ;;  %v1244_v1 = vpop.f32.mrb[9].mxu1  ;;  %v1185_v62 = vld [vmem:[%s1712_s4] ss:$0 sm:$0xff] }
 0x5f5   : > { %v622_v2 = vpop.f32.mrb[10].mxu1 }
 0x5f6   : > { %v1245_v3 = vpop.f32.mrb[11].mxu1 }
 0x5fb   : > { %v716_v4 = vpop.f32.mrb[12].mxu1 }
 0x5fc   : > { %v1256_v5 = vpop.f32.mrb[13].mxu1  ;;  %v722_v6 = vsel %vm353_vm1, %v716_v4, -inf }
 0x5fd   : > { %723 = vmax.xlane.f32.xlu1 %v722_v6  ;;  %v719_v7 = vpop.f32.mrb[14].mxu1 }
 0x5fe   : > { %v1257_v8 = vpop.f32.mrb[15].mxu1 }
 0x60e   : > { %734 = vrot.lane.b32.xlu1 %v1546_v9, %s1426_s21  ;;  %s1039_s21 = scalar_lea.sflag [#allocation3], %s327_s12 }
 0x612   : > { %831 = vrot.lane.b32.xlu1 %v1553_v17, %s1427_s22 }
 0x68a   : > { %v724_v10 = vpop.xlane.xlu1 %723 }
 0x68b   : > { %v725_v11 = vsub.f32 %v716_v4, %v724_v10 }
 0x68d   : > { %v726_v12 = vmul.f32 1.442695, %v725_v11 }
 0x68e   : > { %v735_v15 = vpop.permute.xlu1 %734 }
 0x68f   : > { %1346 = vpow2.f32 %v726_v12  ;;  %v740_v16 = vsel %vm420_vm2, %v735_v15, 0 }
 0x690   : > { %1259 = vmatpush3.bf16.msra.mxu0 %v740_v16 }
 0x691   : > { %1270 = vmatprep.subr.bf16.mxu0 %v1420_v0 }
 0x692   : > { %v832_v26 = vpop.permute.xlu1 %831 }
 0x699   : > { %v1347_v13 = vpop.eup %1346 }
 0x69a   : > { %v728_v14 = vsel %vm353_vm1, %v1347_v13, 0.0 }
 0x69b   : > { %729 = vadd.xlane.f32.xlu0 %v728_v14 }
 0x6b1   : > { %833 = vrot.lane.b32.xlu0 %v1546_v9, %s1427_s22  ;;  %s341_s22 = scalar_lea.vmem %s1710_s2, %s1717_s19  ;;  %s1362_s19 = scalar_lea.vmem %s1361_s24, 256 }
 0x6b2   : > { %v998_v3 = vld [vmem:[%s341_s22] sm:$0xff]  ;;  %s1356_s22 = scalar_lea.vmem %s1056_s26, 128 }
 0x6b3   : > { %p1357_p11 = scmp.ne.s32.totalorder %s1056_s26, %s1356_s22  ;;  %p1364_p1 = scmp.lt.s32.totalorder %s1362_s19, %s1356_s22 }
 0x6b5   : > { %p1358_p12 = pnand %p1357_p11, %p1513_p5  ;;  %p1365_p2 = por %p1364_p1, %p1363_p0 }
 0x6b7   : > { %p1359_p13 = pneg %p1358_p12 }
 0x6b9   : > { %p1366_p3 = pnand %p1365_p2, %p1359_p13 }
 0x728   : > { %v730_v18 = vpop.xlane.xlu0 %729 }
 0x729   : > { %1348 = vrcp.f32 %v730_v18 }
 0x72c   : > { %v834_v17 = vpop.permute.xlu0 %833 }
 0x72d   : > { %v839_v23 = vsel %vm353_vm1, %v834_v17, 0 }
 0x733   : > { %v1349_v19 = vpop.eup %1348 }
 0x734   : > { %v732_v20 = vmul.f32 %v1349_v19, %v1347_v13 }
 0x736   : > { %v733_v24 = vpack.c.bf16 %v732_v20, %v732_v20  ;;  %v830_v25 = vadd.f32 %v732_v20, %v671_v22 }
 0x738   : > { %1261 = vmatmul.mubr.msk.bf16.vlgmr.msra.gmra.mrb[12].mxu0 %vm353_vm1, %v733_v24 }
 0x739   : > { %1271 = vmatpush3.bf16.xpose.msra.mxu0 %v839_v23  ;;  %1272 = vmatprep.mubr.msk.bf16.mxu0 %vm1421_vm0, %v1420_v0 }
 0x73a   : > { %1282 = vmatprep.subr.bf16.mxu0 %v1420_v0 }
 0x740   : > { %1273 = vmatmul.mubr.msk.bf16.vlgmr.msra.gmra.mrb[16].mxu0 %vm353_vm1, %v832_v26 }
 0x741   : > { %1284 = vmatprep.mubr.msk.bf16.mxu0 %vm1421_vm0, %v1420_v0 }
 0x80b   : > { %v776_v28 = vpop.f32.mrb[12].mxu0 }
 0x80c   : > { %v782_v29 = vpack.c.bf16 %v776_v28, %v776_v28  ;;  %v1262_v30 = vpop.f32.mrb[13].mxu0 }
 0x80d   : > { %v779_v31 = vpop.f32.mrb[14].mxu0 }
 0x80e   : > { %v1263_v32 = vpop.f32.mrb[15].mxu0  ;;  %1267 = vmatmul.mubr.msk.bf16.vlgmr.msra.gmra.mrb[16].mxu1 %vm353_vm1, %v782_v29 }
 0x80f   : > { %1278 = vmatprep.mubr.msk.bf16.mxu1 %vm1421_vm0, %v1420_v0 }
 0x813   : > { %v875_v33 = vpop.f32.mrb[16].mxu0 }
 0x814   : > { %v1274_v34 = vpop.f32.mrb[17].mxu0  ;;  %v881_v35 = vsel %vm353_vm1, %v875_v33, -inf }
 0x815   : > { %882 = vmax.xlane.f32.xlu1 %v881_v35  ;;  %v878_v36 = vpop.f32.mrb[18].mxu0 }
 0x816   : > { %v1275_v37 = vpop.f32.mrb[19].mxu0 }
 0x826   : > { %893 = vrot.lane.b32.xlu1 %v1546_v9, %s1428_s25  ;;  %v946_v9 = vsel %vm420_vm2, %v352_v44, 0  ;;  %s1189_s25 = sshll.u32 %s1496_s9, 7 }
 0x827   : > { %1283 = vmatpush3.bf16.msra.mxu0 %v946_v9  ;;  %s1658_s20 = scalar_lea.hbm %s1716_s8, %s1189_s25 }
 0x8a2   : > { %v883_v38 = vpop.xlane.xlu1 %882 }
 0x8a3   : > { %v884_v39 = vsub.f32 %v875_v33, %v883_v38 }
 0x8a5   : > { %v885_v40 = vmul.f32 1.442695, %v884_v39 }
 0x8a6   : > { %v894_v0 = vpop.permute.xlu1 %893 }
 0x8a7   : > { %1350 = vpow2.f32 %v885_v40  ;;  %v899_v43 = vsel %vm420_vm2, %v894_v0, 0 }
 0x8a8   : > { %1277 = vmatpush3.bf16.msra.mxu1 %v899_v43 }
 0x8b1   : > { %v1351_v41 = vpop.eup %1350 }
 0x8b2   : > { %v887_v42 = vsel %vm353_vm1, %v1351_v41, 0.0 }
 0x8b3   : > { %888 = vadd.xlane.f32.xlu0 %v887_v42 }
 0x8e1   : > { %v823_v45 = vpop.f32.mrb[16].mxu1 }
 0x8e2   : > { %v829_v46 = vadd.f32 %v823_v45, %v1599_v63  ;;  %v1268_v47 = vpop.f32.mrb[17].mxu1 }
 0x8e3   : > { %v826_v48 = vpop.f32.mrb[18].mxu1 }
 0x8e4   : > { %v1269_v49 = vpop.f32.mrb[19].mxu1 }
 0x940   : > { %v889_v50 = vpop.xlane.xlu0 %888 }
 0x941   : > { %1352 = vrcp.f32 %v889_v50 }
 0x94b   : > { %v1353_v51 = vpop.eup %1352 }
 0x94c   : > { %v891_v52 = vmul.f32 %v1353_v51, %v1351_v41 }
 0x94e   : > { %v892_v53 = vpack.c.bf16 %v891_v52, %v891_v52  ;;  %v989_v54 = vadd.f32 %v891_v52, %v830_v25 }
 0x950   : > { %1279 = vmatmul.mubr.msk.bf16.vlgmr.msra.gmra.mrb[20].mxu1 %vm353_vm1, %v892_v53  ;;  %v1032_v55 = vmul.f32 0.25, %v989_v54 }
 0x952   : > { %1033 = vst.msk [vmem:[%s329_s18] sm:$0xff] %vm353_vm1, %v1032_v55 }
 0xa23   : > { %v935_v56 = vpop.f32.mrb[20].mxu1 }
 0xa24   : > { %v941_v57 = vpack.c.bf16 %v935_v56, %v935_v56  ;;  %v1280_v58 = vpop.f32.mrb[21].mxu1 }
 0xa25   : > { %v938_v59 = vpop.f32.mrb[22].mxu1 }
 0xa26   : > { %v1281_v60 = vpop.f32.mrb[23].mxu1  ;;  %1285 = vmatmul.mubr.msk.bf16.vlgmr.msra.gmra.mrb[20].mxu0 %vm353_vm1, %v941_v57 }
 0xaf9   : > { %v982_v61 = vpop.f32.mrb[20].mxu0 }
 0xafa   : > { %v988_v63 = vadd.f32 %v982_v61, %v829_v46  ;;  %v1286_v1 = vpop.f32.mrb[21].mxu0 }
 0xafb   : > { %v985_v2 = vpop.f32.mrb[22].mxu0 }
 0xafc   : > { %v997_v4 = vadd.f32 %v1185_v62, %v988_v63  ;;  %v1287_v5 = vpop.f32.mrb[23].mxu0 }
 0xafe   : > { %v999_v6 = vadd.f32 %v998_v3, %v997_v4 }
 0xb00   : > { %v1001_v7 = vsel %vm1000_vm3, %v999_v6, 0.0 }
 0xb01   : > { %1002 = vadd.xlane.f32.xlu0 %v1001_v7 }
 0xb8e   : > { %v1003_v8 = vpop.xlane.xlu0 %1002 }
 0xb8f   : > { %v1005_v10 = vmul.f32 0.03125, %v1003_v8 }
 0xb91   : > { %v1006_v11 = vsub.f32 %v999_v6, %v1005_v10 }
 0xb93   : > { %v1007_v12 = vmul.f32 %v1006_v11, %v1006_v11 }
 0xb95   : > { %v1008_v13 = vsel %vm1000_vm3, %v1007_v12, 0.0 }
 0xb96   : > { %1009 = vadd.xlane.f32.xlu0 %v1008_v13 }
 0xb97   : > { %1369 = shalt.err (!%p1366_p3)
}
 0xb98   : > { %s1370_s9 = scalar_lea.hbm %s1658_s20, 128  ;;  %s1374_s25 = scalar_lea.hbm %s1716_s8, 256 }
 0xb99   : > { %p1371_p4 = scmp.ne.s32.totalorder %s1658_s20, %s1370_s9  ;;  %p1375_p9 = scmp.lt.u32.totalorder %s1658_s20, %s1716_s8 }
 0xb9a   : > { %p1376_p10 = scmp.lt.u32.totalorder %s1374_s25, %s1370_s9  ;;  %p1378_p12 = scmp.lt.u32.totalorder %s1370_s9, %s1658_s20 }
 0xb9b   : > { %p1372_p7 = pnand %p1371_p4, %p1513_p5 }
 0xb9c   : > { %p1377_p11 = por %p1376_p10, %p1375_p9 }
 0xb9d   : > { %p1373_p8 = pneg %p1372_p7 }
 0xb9e   : > { %p1379_p13 = por %p1378_p12, %p1377_p11 }
 0xba0   : > { %p1380_p0 = pnand %p1379_p13, %p1373_p8 }
 0xba2   : > { %1383 = shalt.err (!%p1380_p0)
}
 0xba3   : > { %1288 = dma.vmem_to_hbm [thread:$0]  (%p1513_p5), %s1056_s26, 128, %s1658_s20, %s1039_s21   ;;  %v1186_v19 = vld [vmem:[%s1713_s5] ss:$0 sm:$0xff] }
 0xba4   : > { %v1187_v20 = vld [vmem:[%s1714_s6] ss:$0 sm:$0xff]  ;;  %s1720_s9 = sshll.u32 %s1528_s17, 3 }
 0xba5   : > { %s345_s26 = scalar_lea.vmem %s1715_s7, %s1720_s9 }
 0xc23   : > { %v1010_v14 = vpop.xlane.xlu0 %1009 }
 0xc24   : > { %v1011_v15 = vmul.f32 0.03125, %v1010_v14 }
 0xc26   : > { %v1012_v16 = vadd.f32 1e-05, %v1011_v15 }
 0xc28   : > { %1354 = vrsqrt.f32 %v1012_v16 }
 0xc32   : > { %v1355_v18 = vpop.eup %1354 }
 0xc33   : > { %v1014_v17 = vmul.f32 %v1355_v18, %v1006_v11 }
 0xc35   : > { %v1022_v22 = vmul.f32 %v1186_v19, %v1014_v17 }
 0xc37   : > { %v1030_v23 = vadd.f32 %v1187_v20, %v1022_v22 }
 0xc39   : > { %1031 = vst.msk [vmem:[%s345_s26] sm:$0xff] %vm1000_vm3, %v1030_v23 }
 0xc3a PF: > { %p1294_p5 = scmp.ge.s32.totalorder %s1418_s30, 2  ;;  %s1074_s20 = sand.u32 1, %s1406_s27  }
 0xc3b   : > { %s1075_s21 = scalar_lea.sflag [#allocation3], %s1074_s20 }
 0xc3c   : > { %p1291_p1 = pnand %p1294_p5, %p1517_p6 }
 0xc3e   : > { %1401 = dma.done.wait (!%p1291_p1), %s1075_s21, 128  }
 0xc3f   : > { %1403 = vsyncadd (!%p1291_p1), %s1075_s21, 4294967168  ;;  %p19_p2 = scmp.ge.s32.totalorder %s1500_s11, 4   ;;  %s1721_s27 = smov %s1410_s28 }
 0xc40   : > { %s1722_s28 = smov %s1414_s29  ;;  %s1723_s29 = smov %s1511_s14 }
 0xc41   : > { %s1724_s30 = smov %s1500_s11  ;;  %21 = sbr.rel (!%p19_p2) target bundleno = 3 (0x3), region = 101 }
 0xc48   :  { %1080 = vsyncpa [#allocation3], 1 }
 0xc49   :  { %1082 = vsyncpa [#allocation3 + $0x1], 1 }

// kernel: decoder_layer_phase2_forward.13
= control target key start
LH: loop header
LB: loop body
LE: loop exit
PB: predicated region body
PF: predicated region fallthrough
CT: control target
= control target key end

     0   :  { %v304_v0 = vmov 0.0   ;;  %vm305_vm0 = vmmov 0   ;;  %vm67_vm1 = vcmask 261120   ;;  %vm154_vm2 = vcmask 523264   ;;  %s417_s3 = inlined_call_operand.vmem [shape: bf16[32,64], index: 3, kind: input, shape index: {}]   ;;  %s418_s0 = inlined_call_operand.vmem [shape: f32[16,32], index: 0, kind: input, shape index: {}]   ;;  %s419_s1 = inlined_call_operand.vmem [shape: f32[16,32], index: 1, kind: input, shape index: {}]   ;;  %s420_s2 = inlined_call_operand.vmem [shape: f32[16,32], index: 2, kind: input, shape index: {}]   ;;  %s421_s5 = inlined_call_operand.vmem [shape: bf16[64,32], index: 5, kind: input, shape index: {}]   ;;  %s422_s4 = inlined_call_operand.vmem [shape: f32[1,64], index: 4, kind: input, shape index: {}]   ;;  %s423_s6 = inlined_call_operand.vmem [shape: f32[1,32], index: 6, kind: input, shape index: {}]   ;;  %s424_s7 = inlined_call_operand.vmem [shape: f32[1,32], index: 7, kind: input, shape index: {}]   ;;  %s425_s8 = inlined_call_operand.vmem [shape: f32[1,32], index: 8, kind: input, shape index: {}]   ;;  %s426_s9 = inlined_call_operand.vmem [shape: f32[16,32], index: 9, kind: output, shape index: {}]  }
   0x1   :  { %272 = vmatprep.subr.bf16.mxu0 %v304_v0  ;;  %v294_v1 = vld [vmem:[%s417_s3] sm:$0xff]   ;;  %276 = vmatprep.mubr.msk.bf16.mxu0 %vm305_vm0, %v304_v0  ;;  %v295_v2 = vld [vmem:[%s417_s3 + $0x8] sm:$0xff]   ;;  %v298_v16 = vld [vmem:[%s421_s5 + $0x10] sm:$0xff]  }
   0x2   :  { %280 = vmatprep.subr.bf16.mxu1 %v304_v0  ;;  %288 = vmatprep.mubr.msk.bf16.mxu1 %vm305_vm0, %v304_v0  ;;  %v33_v3 = vld [vmem:[%s418_s0] sm:$0xff]  ;;  %v34_v4 = vld [vmem:[%s418_s0 + $0x8] sm:$0xff]  ;;  %v299_v17 = vld [vmem:[%s421_s5 + $0x18] sm:$0xff]  }
   0x3   :  { %273 = vmatpush3.bf16.msra.mxu0 %v294_v1  ;;  %v35_v5 = vld [vmem:[%s419_s1] sm:$0xff]  ;;  %v36_v6 = vld [vmem:[%s419_s1 + $0x8] sm:$0xff] }
   0x4   :  { %274 = vmatprep.subr.bf16.mxu0 %v304_v0  ;;  %v37_v7 = vadd.f32 %v35_v5, %v33_v3  ;;  %v39_v8 = vld [vmem:[%s420_s2] sm:$0xff]  ;;  %v40_v9 = vld [vmem:[%s420_s2 + $0x8] sm:$0xff]  ;;  %v38_v10 = vadd.f32 %v36_v6, %v34_v4 }
   0x5   :  { %v296_v11 = vld [vmem:[%s421_s5] sm:$0xff]   ;;  %v297_v14 = vld [vmem:[%s421_s5 + $0x8] sm:$0xff]  }
   0x6   :  { %v41_v12 = vadd.f32 %v39_v8, %v37_v7  ;;  %v42_v13 = vadd.f32 %v40_v9, %v38_v10  ;;  %281 = vmatpush3.bf16.msra.mxu1 %v296_v11  ;;  %v252_v18 = vld [vmem:[%s422_s4] ss:$0 sm:$0xff] }
   0x7   :  { %275 = vmatpush3.bf16.msra.mxu0 %v295_v2  ;;  %282 = vmatprep.subr.bf16.mxu1 %v304_v0  ;;  %v256_v28 = vld [vmem:[%s423_s6] ss:$0 sm:$0xff] }
   0x8   :  { %v43_v15 = vpack.c.bf16 %v42_v13, %v41_v12  ;;  %v262_v56 = vld [vmem:[%s424_s7] ss:$0 sm:$0xff] }
   0x9   :  { %v263_v58 = vld [vmem:[%s425_s8] ss:$0 sm:$0xff] }
   0xa   :  { %277 = vmatmul.mubr.msk.bf16.vlgmr.msra.gmra.mrb[0].mxu0 %vm67_vm1, %v43_v15  ;;  %283 = vmatpush3.bf16.msra.mxu1 %v297_v14 }
   0xb   :  { %284 = vmatprep.subr.bf16.mxu1 %v304_v0 }
   0xe   :  { %285 = vmatpush3.bf16.msra.mxu1 %v298_v16 }
   0xf   :  { %286 = vmatprep.subr.bf16.mxu1 %v304_v0 }
  0x12   :  { %287 = vmatpush3.bf16.msra.mxu1 %v299_v17 }
  0xdd   :  { %v105_v19 = vpop.f32.mrb[0].mxu0 }
  0xde   :  { %v106_v20 = vadd.f32 %v252_v18, %v105_v19  ;;  %v278_v21 = vpop.f32.mrb[1].mxu0 }
  0xdf   :  { %v108_v22 = vpop.f32.mrb[2].mxu0 }
  0xe0   :  { %v109_v23 = vadd.f32 %v252_v18, %v108_v22  ;;  %v279_v24 = vpop.f32.mrb[3].mxu0  ;;  %v112_v25 = vmax.f32 %v106_v20, 0.0 }
  0xe2   :  { %v113_v26 = vmax.f32 %v109_v23, 0.0 }
  0xe4   :  { %v114_v27 = vpack.c.bf16 %v113_v26, %v112_v25 }
  0xe6   :  { %289 = vmatmul.mubr.msk.bf16.vlgmr.msra.gmra.mrb[0].mxu1 %vm154_vm2, %v114_v27 }
 0x1b9   :  { %v192_v29 = vpop.f32.mrb[0].mxu1 }
 0x1ba   :  { %v193_v30 = vadd.f32 %v256_v28, %v192_v29  ;;  %v290_v31 = vpop.f32.mrb[1].mxu1 }
 0x1bb   :  { %v195_v32 = vpop.f32.mrb[2].mxu1 }
 0x1bc   :  { %v196_v33 = vadd.f32 %v256_v28, %v195_v32  ;;  %v291_v34 = vpop.f32.mrb[3].mxu1  ;;  %v199_v35 = vadd.f32 %v193_v30, %v41_v12 }
 0x1be   :  { %v201_v36 = vsel %vm67_vm1, %v199_v35, 0.0  ;;  %v200_v37 = vadd.f32 %v196_v33, %v42_v13 }
 0x1bf   :  { %202 = vadd.xlane.f32.xlu0 %v201_v36 }
 0x1c0   :  { %v204_v38 = vsel %vm67_vm1, %v200_v37, 0.0 }
 0x1c3   :  { %205 = vadd.xlane.f32.xlu0 %v204_v38 }
 0x24c   :  { %v203_v39 = vpop.xlane.xlu0 %202 }
 0x24d   :  { %v208_v40 = vmul.f32 0.03125, %v203_v39 }
 0x24f   :  { %v210_v41 = vsub.f32 %v199_v35, %v208_v40 }
 0x250   :  { %v206_v42 = vpop.xlane.xlu0 %205 }
 0x251   :  { %v209_v43 = vmul.f32 0.03125, %v206_v42  ;;  %v212_v44 = vmul.f32 %v210_v41, %v210_v41 }
 0x253   :  { %v211_v45 = vsub.f32 %v200_v37, %v209_v43  ;;  %v214_v46 = vsel %vm67_vm1, %v212_v44, 0.0 }
 0x254   :  { %215 = vadd.xlane.f32.xlu1 %v214_v46 }
 0x255   :  { %v213_v47 = vmul.f32 %v211_v45, %v211_v45 }
 0x257   :  { %v217_v48 = vsel %vm67_vm1, %v213_v47, 0.0 }
 0x258   :  { %218 = vadd.xlane.f32.xlu1 %v217_v48 }
 0x2e1   :  { %v216_v49 = vpop.xlane.xlu1 %215 }
 0x2e2   :  { %v220_v50 = vmul.f32 0.03125, %v216_v49 }
 0x2e4   :  { %v222_v51 = vadd.f32 1e-05, %v220_v50 }
 0x2e5   :  { %v219_v52 = vpop.xlane.xlu1 %218 }
 0x2e6   :  { %300 = vrsqrt.f32 %v222_v51  ;;  %v221_v53 = vmul.f32 0.03125, %v219_v52 }
 0x2e8   :  { %v223_v54 = vadd.f32 1e-05, %v221_v53 }
 0x2ea   :  { %302 = vrsqrt.f32 %v223_v54 }
 0x2f0   :  { %v301_v55 = vpop.eup %300 }
 0x2f1   :  { %v226_v57 = vmul.f32 %v301_v55, %v210_v41 }
 0x2f3   :  { %v235_v59 = vmul.f32 %v262_v56, %v226_v57 }
 0x2f4   :  { %v303_v60 = vpop.eup %302 }
 0x2f5   :  { %v244_v61 = vadd.f32 %v263_v58, %v235_v59  ;;  %v227_v62 = vmul.f32 %v303_v60, %v211_v45 }
 0x2f7   :  { %246 = vst.msk [vmem:[%s426_s9] sm:$0xff] %vm67_vm1, %v244_v61  ;;  %v236_v63 = vmul.f32 %v262_v56, %v227_v62 }
 0x2f9   :  { %v245_v0 = vadd.f32 %v263_v58, %v236_v63 }
 0x2fb   :  { %247 = vst.msk [vmem:[%s426_s9 + $0x8] sm:$0xff] %vm67_vm1, %v245_v0 }

</bundles_post_ra>
